<compile_context>
chip_gen: v7x
topology: tpu7x:2x2x1
jax: 0.10.0
libtpu: 0.0.40
codegen_flags: <defaults>
</compile_context>

<pallas_src>
from functools import partial

import numpy as np
import jax
import jax.numpy as jnp
from jax.experimental import pallas as pl
from jax.experimental.pallas import tpu as pltpu

# ---------------- config (mirrors the PyTorch `config`) ----------------
VOCAB = 100
WORD_EMB_DIM = 32      # config.word_emb_dim
EMB_DIM = 32           # config.emb_dim
FILTER_SIZE = 3        # config.filter_size (kernel hard-codes the 3 taps)
PAD = FILTER_SIZE // 2
NUM_LAYERS = 6
BATCH = 2
SEQ_LEN = 128          # must be >= 65 so all 6 conv/pool stages keep length >= 1

ROWPAD = 8             # sublane-aligned left padding inside the conv scratch

assert FILTER_SIZE == 3 and PAD == 1


def _stage_lengths(seq_len):
    """Lengths after each [conv(pad=1) -> pool(stride 2)] stage (and shape guard)."""
    lens, L = [], seq_len
    for l in range(NUM_LAYERS):
        pk = 3 if l == 0 else 2
        assert L >= pk, "sequence too short for the 6 conv/pool stages"
        L = (L - pk) // 2 + 1
        lens.append(L)
    return lens


# ---------------- Pallas kernel ----------------
def _ste_kernel(x_ref, w0_ref, b0_ref, wr_ref, br_ref, wa_ref, ba_ref, o_ref,
                pad_ref, pool_ref):
    """Full conv stack for the whole (lane-packed) batch in one invocation.

    x_ref:    (L0, B*word_emb_dim)        lane-packed embedded tokens [b0 ch | b1 ch | ...]
    w0_ref:   (3*B*word_emb_dim, B*E)     layer-0 block-diag fused-tap conv weight
    wr_ref:   (5, 3*B*E, B*E)             remaining conv weights, taps stacked k-major
    b0/br:    (1, B*E) / (5, 1, B*E)      biases tiled across the batch blocks
    wa_ref:   (B*E, B*E)                  block-diag align_layer weight (pre-transposed)
    ba_ref:   (1, B*E)
    o_ref:    (1, B*E)
    pad_ref:  (ROWPAD+L0+8, cp)           zero-padded activation scratch
    pool_ref: (L0, B*E)                   conv-output scratch for strided pooling
    """
    L0, bew = x_ref.shape
    be = o_ref.shape[-1]
    cp = pad_ref.shape[-1]

    # Only row ROWPAD-1 is ever read as the t = -1 tap; zero just that one row.
    # NOTE: correctness relies on every later write starting at row >= ROWPAD.
    pad_ref[pl.ds(ROWPAD - 1, 1), :] = jnp.zeros((1, cp), jnp.float32)

    x = x_ref[...]                                   # (L0, B*EW)
    L = L0
    for l in range(NUM_LAYERS):
        bcin = bew if l == 0 else be
        # --- Conv1d(k=3, pad=1): 3 taps x whole batch fused into ONE MXU dot ----
        pad_ref[pl.ds(ROWPAD, L), 0:bcin] = x
        pad_ref[pl.ds(ROWPAD + L, 1), 0:bcin] = jnp.zeros((1, bcin), jnp.float32)
        left = pad_ref[pl.ds(ROWPAD - 1, L), 0:bcin]    # x[t-1]  (0 at t=0)
        right = pad_ref[pl.ds(ROWPAD + 1, L), 0:bcin]   # x[t+1]  (0 at t=L-1)
        x3 = jnp.concatenate([left, x, right], axis=1)  # (L, 3*B*cin), taps k-major
        w = w0_ref[...] if l == 0 else wr_ref[l - 1]    # (3*B*cin, B*E) block-diag
        b = b0_ref[...] if l == 0 else br_ref[l - 1]    # (1, B*E)
        y = jnp.dot(x3, w, preferred_element_type=jnp.float32) + b   # (L, B*E)
        # --- MaxPool1d(pool_k, stride=2) + ReLU via strided ref reads (no int idx) ---
        pool_k = 3 if l == 0 else 2
        Lp = (L - pool_k) // 2 + 1
        pool_ref[pl.ds(0, L), :] = y
        m = pool_ref[pl.ds(0, Lp, stride=2), :]
        for j in range(1, pool_k):
            m = jnp.maximum(m, pool_ref[pl.ds(j, Lp, stride=2), :])
        x = jnp.maximum(m, 0.0)                          # ReLU
        L = Lp
    feat = jnp.max(x, axis=0, keepdims=True)             # torch.max over length -> (1, B*E)
    # TODO(synk): nn.Dropout(0.15) is eval-mode identity here; training-mode masking not implemented.
    o_ref[...] = jnp.tanh(jnp.dot(feat, wa_ref[...], preferred_element_type=jnp.float32)
                          + ba_ref[...])                  # align_layer: Linear + Tanh


# ---------------- wrappers ----------------
@partial(jax.jit, static_argnames=("batch",))
def short_term_encoder(x_pack, w0_big, b0_big, wr_big, br_big, wa_big, ba_big, *, batch):
    L, bew = x_pack.shape
    be = wa_big.shape[1]
    cp = max(bew, be)
    _stage_lengths(L)                                    # shape guard
    out = pl.pallas_call(
        _ste_kernel,
        out_shape=jax.ShapeDtypeStruct((1, be), jnp.float32),
        grid_spec=pltpu.PrefetchScalarGridSpec(
            num_scalar_prefetch=0,
            grid=(1,),
            in_specs=[
                pl.BlockSpec(x_pack.shape, lambda g: (0, 0)),
                pl.BlockSpec(w0_big.shape, lambda g: (0, 0)),
                pl.BlockSpec(b0_big.shape, lambda g: (0, 0)),
                pl.BlockSpec(wr_big.shape, lambda g: (0, 0, 0)),
                pl.BlockSpec(br_big.shape, lambda g: (0, 0, 0)),
                pl.BlockSpec(wa_big.shape, lambda g: (0, 0)),
                pl.BlockSpec(ba_big.shape, lambda g: (0, 0)),
            ],
            out_specs=pl.BlockSpec((1, be), lambda g: (0, 0)),
            scratch_shapes=[
                pltpu.VMEM((ROWPAD + L + 8, cp), jnp.float32),  # padded activation scratch
                pltpu.VMEM((L, be), jnp.float32),               # conv output for pooling
            ],
        ),
        compiler_params=pltpu.CompilerParams(dimension_semantics=("arbitrary",)),
    )(x_pack, w0_big, b0_big, wr_big, br_big, wa_big, ba_big)
    return out.reshape(batch, be // batch)


@jax.jit
def short_term_encoder_special(x_emb, w2_t, b2):
    # is_special=True path: x[:, 1, :] -> Linear -> Tanh.  One tiny matmul; left to
    # XLA since a pallas_call launch + DMA would cost more than the math itself.
    return jnp.tanh(x_emb[:, 1, :] @ w2_t + b2)


# ---------------- glue: lane-packed layouts ----------------
def pack_inputs(x_emb):
    """(B, L, EW) -> (L, B*EW) with element b occupying lanes [b*EW, (b+1)*EW)."""
    B, L, EW = x_emb.shape
    return jnp.transpose(x_emb, (1, 0, 2)).reshape(L, B * EW)


def pack_params(conv_w, conv_b, wa, ba, batch):
    """Fused-tap, batch-block-diagonal weights for the lane-packed kernel."""
    eye_b = jnp.eye(batch, dtype=jnp.float32)

    def fuse(w):                       # (Cout, Cin, 3) -> (3*B*Cin, B*Cout)
        return jnp.concatenate(
            [jnp.kron(eye_b, w[:, :, k].T) for k in range(w.shape[2])], axis=0)

    w0_big = fuse(conv_w[0])
    wr_big = jnp.stack([fuse(conv_w[l]) for l in range(1, NUM_LAYERS)])
    b0_big = jnp.tile(conv_b[0], batch)[None, :]
    br_big = jnp.stack([jnp.tile(conv_b[l], batch)[None, :]
                        for l in range(1, NUM_LAYERS)])
    wa_big = jnp.kron(eye_b, wa.T)                  # (B*E, B*E)
    ba_big = jnp.tile(ba, batch)[None, :]
    return w0_big, b0_big, wr_big, br_big, wa_big, ba_big


# ---------------- pure-JAX reference (for self-check) ----------------
def reference_forward(ids, params, is_special=False):
    x = params["embed"][ids]                                   # (B, L, EW)
    if is_special:
        return jnp.tanh(x[:, 1, :] @ params["w2_t"] + params["b2"])
    t = x
    for l in range(NUM_LAYERS):
        w = params["conv_w"][l]                                # (Cout, Cin, K)
        bias = params["conv_b"][l]
        Cout, Cin, K = w.shape
        L = t.shape[1]
        Lout = L + 2 * PAD - K + 1
        tp = jnp.pad(t, ((0, 0), (PAD, PAD), (0, 0)))
        acc = jnp.zeros((t.shape[0], Lout, Cout), jnp.float32)
        for k in range(K):
            acc = acc + jnp.einsum("blc,oc->blo", tp[:, k:k + Lout, :], w[:, :, k])
        t = acc + bias[None, None, :]
        pk = 3 if l == 0 else 2
        Lp = (Lout - pk) // 2 + 1
        t = jnp.max(jnp.stack(
            [t[:, j:j + 2 * (Lp - 1) + 1:2, :] for j in range(pk)], 0), axis=0)
        t = jax.nn.relu(t)
    feat = jnp.max(t, axis=1)
    return jnp.tanh(feat @ params["wa_t"] + params["ba"])


if __name__ == "__main__":
    key = jax.random.PRNGKey(0)
    keys = jax.random.split(key, 32)

    # Deterministic parameter init (shapes follow the module's __init__).
    embed = jax.random.normal(keys[0], (VOCAB, WORD_EMB_DIM), jnp.float32)
    embed = embed.at[0].set(0.0)                               # padding_idx=0

    conv_w, conv_b = [], []
    for l in range(NUM_LAYERS):
        cin = WORD_EMB_DIM if l == 0 else EMB_DIM
        bound = 1.0 / np.sqrt(cin * FILTER_SIZE)
        conv_w.append(jax.random.uniform(keys[1 + l], (EMB_DIM, cin, FILTER_SIZE),
                                         jnp.float32, -bound, bound))
        conv_b.append(jax.random.uniform(keys[7 + l], (EMB_DIM,),
                                         jnp.float32, -bound, bound))

    bound = 1.0 / np.sqrt(EMB_DIM)
    wa = jax.random.uniform(keys[13], (EMB_DIM, EMB_DIM), jnp.float32, -bound, bound)
    ba = jax.random.uniform(keys[14], (EMB_DIM,), jnp.float32, -bound, bound)
    bound2 = 1.0 / np.sqrt(WORD_EMB_DIM)
    w2 = jax.random.uniform(keys[15], (EMB_DIM, WORD_EMB_DIM), jnp.float32, -bound2, bound2)
    b2 = jax.random.uniform(keys[16], (EMB_DIM,), jnp.float32, -bound2, bound2)

    ids = jax.random.randint(keys[17], (BATCH, SEQ_LEN), 0, VOCAB, jnp.int32)

    # Glue: embedding gather (12.8 KB table, kept in XLA) + lane-packed weight layouts.
    x_emb = embed[ids]                                         # (B, L, EW)
    x_pack = pack_inputs(x_emb)                                # (L, B*EW)
    w0_big, b0_big, wr_big, br_big, wa_big, ba_big = pack_params(
        conv_w, conv_b, wa, ba, BATCH)
    w2k = w2.T                                                 # (EW, E)

    out = jax.block_until_ready(
        short_term_encoder(x_pack, w0_big, b0_big, wr_big, br_big, wa_big, ba_big,
                           batch=BATCH))
    out_sp = jax.block_until_ready(short_term_encoder_special(x_emb, w2k, b2))

    params = dict(embed=embed, conv_w=conv_w, conv_b=conv_b,
                  wa_t=wa.T, ba=ba, w2_t=w2.T, b2=b2)
    ref = reference_forward(ids, params, is_special=False)
    ref_sp = reference_forward(ids, params, is_special=True)
    # Default single-pass MXU precision (per perf review) rounds f32 dot operands through
    # bf16 on real hardware, so allow O(1e-3) drift over the 6-layer conv stack.
    np.testing.assert_allclose(np.asarray(out), np.asarray(ref), rtol=1e-2, atol=1e-2)
    np.testing.assert_allclose(np.asarray(out_sp), np.asarray(ref_sp), rtol=2e-3, atol=2e-3)

    print("KERNEL_OK")
</pallas_src>

<mosaic_0001>
module attributes {stable_mosaic.version = 11 : i64} {
  func.func @_ste_kernel(%arg0: i32, %arg1: memref<128x64xf32, #tpu.memory_space<vmem>>, %arg2: memref<192x64xf32, #tpu.memory_space<vmem>>, %arg3: memref<1x64xf32, #tpu.memory_space<vmem>>, %arg4: memref<5x192x64xf32, #tpu.memory_space<vmem>>, %arg5: memref<5x1x64xf32, #tpu.memory_space<vmem>>, %arg6: memref<64x64xf32, #tpu.memory_space<vmem>>, %arg7: memref<1x64xf32, #tpu.memory_space<vmem>>, %arg8: memref<1x64xf32, #tpu.memory_space<vmem>>, %arg9: memref<144x64xf32, #tpu.memory_space<vmem>>, %arg10: memref<128x64xf32, #tpu.memory_space<vmem>>) attributes {dimension_semantics = [#tpu.dimension_semantics<arbitrary>], iteration_bounds = array<i64: 1>, scalar_prefetch = 0 : i64, scratch_operands = 2 : i64, tpu.core_type = #tpu.core_type<tc>, window_params = [{pipeline_mode = #tpu.pipeline_mode<synchronous>, transform_indices = @transform_0, window_bounds = array<i64: 128, 64>}, {pipeline_mode = #tpu.pipeline_mode<synchronous>, transform_indices = @transform_1, window_bounds = array<i64: 192, 64>}, {pipeline_mode = #tpu.pipeline_mode<synchronous>, transform_indices = @transform_2, window_bounds = array<i64: 1, 64>}, {pipeline_mode = #tpu.pipeline_mode<synchronous>, transform_indices = @transform_3, window_bounds = array<i64: 5, 192, 64>}, {pipeline_mode = #tpu.pipeline_mode<synchronous>, transform_indices = @transform_4, window_bounds = array<i64: 5, 1, 64>}, {pipeline_mode = #tpu.pipeline_mode<synchronous>, transform_indices = @transform_5, window_bounds = array<i64: 64, 64>}, {pipeline_mode = #tpu.pipeline_mode<synchronous>, transform_indices = @transform_6, window_bounds = array<i64: 1, 64>}, {pipeline_mode = #tpu.pipeline_mode<synchronous>, transform_indices = @transform_7, window_bounds = array<i64: 1, 64>}]} {
    %cst = arith.constant 0.000000e+00 : f32
    %0 = vector.broadcast %cst : f32 to vector<1x64xf32>
    %c7 = arith.constant 7 : index
    %c0 = arith.constant 0 : index
    %1 = vector.load %arg9[%c7, %c0] : memref<144x64xf32, #tpu.memory_space<vmem>>, vector<1x64xf32>
    tpu.vector_store %arg9[%c7, %c0], %0 {strides = array<i32>} : memref<144x64xf32, #tpu.memory_space<vmem>>, vector<1x64xf32>,
    %c0_0 = arith.constant 0 : index
    %c0_1 = arith.constant 0 : index
    %2 = vector.load %arg1[%c0_0, %c0_1] : memref<128x64xf32, #tpu.memory_space<vmem>>, vector<128x64xf32>
    %c8 = arith.constant 8 : index
    %c0_2 = arith.constant 0 : index
    %3 = vector.load %arg9[%c8, %c0_2] : memref<144x64xf32, #tpu.memory_space<vmem>>, vector<128x64xf32>
    tpu.vector_store %arg9[%c8, %c0_2], %2 {strides = array<i32>} : memref<144x64xf32, #tpu.memory_space<vmem>>, vector<128x64xf32>,
    %cst_3 = arith.constant 0.000000e+00 : f32
    %4 = vector.broadcast %cst_3 : f32 to vector<1x64xf32>
    %c136 = arith.constant 136 : index
    %c0_4 = arith.constant 0 : index
    %5 = vector.load %arg9[%c136, %c0_4] : memref<144x64xf32, #tpu.memory_space<vmem>>, vector<1x64xf32>
    tpu.vector_store %arg9[%c136, %c0_4], %4 {strides = array<i32>} : memref<144x64xf32, #tpu.memory_space<vmem>>, vector<1x64xf32>,
    %c7_5 = arith.constant 7 : index
    %c0_6 = arith.constant 0 : index
    %6 = vector.load %arg9[%c7_5, %c0_6] : memref<144x64xf32, #tpu.memory_space<vmem>>, vector<128x64xf32>
    %c9 = arith.constant 9 : index
    %c0_7 = arith.constant 0 : index
    %7 = vector.load %arg9[%c9, %c0_7] : memref<144x64xf32, #tpu.memory_space<vmem>>, vector<128x64xf32>
    %8 = tpu.concatenate %6, %2, %7 in 1 : vector<128x64xf32>, vector<128x64xf32>, vector<128x64xf32> -> vector<128x192xf32>
    %c0_8 = arith.constant 0 : index
    %c0_9 = arith.constant 0 : index
    %9 = vector.load %arg2[%c0_8, %c0_9] : memref<192x64xf32, #tpu.memory_space<vmem>>, vector<192x64xf32>
    %c0_10 = arith.constant 0 : index
    %c0_11 = arith.constant 0 : index
    %10 = vector.load %arg3[%c0_10, %c0_11] : memref<1x64xf32, #tpu.memory_space<vmem>>, vector<1x64xf32>
    %cst_12 = arith.constant dense<0.000000e+00> : vector<128x64xf32>
    %11 = tpu.matmul %8, %9, %cst_12 {dimension_numbers = #tpu.dot_dimension_numbers<[1], [0], [0], [1], [0, 0, 1, 1], [], []>} : vector<128x192xf32>, vector<192x64xf32>, vector<128x64xf32> -> vector<128x64xf32>
    %12 = vector.broadcast %10 : vector<1x64xf32> to vector<128x64xf32>
    %13 = arith.addf %11, %12 : vector<128x64xf32>
    %c0_13 = arith.constant 0 : index
    %c0_14 = arith.constant 0 : index
    %14 = vector.load %arg10[%c0_13, %c0_14] : memref<128x64xf32, #tpu.memory_space<vmem>>, vector<128x64xf32>
    tpu.vector_store %arg10[%c0_13, %c0_14], %13 {strides = array<i32>} : memref<128x64xf32, #tpu.memory_space<vmem>>, vector<128x64xf32>,
    %c0_15 = arith.constant 0 : index
    %c0_16 = arith.constant 0 : index
    %15 = tpu.strided_load %arg10[%c0_15, %c0_16] {strides = array<i32: 2, 1>} : memref<128x64xf32, #tpu.memory_space<vmem>>, vector<63x64xf32>
    %c1 = arith.constant 1 : index
    %c0_17 = arith.constant 0 : index
    %16 = tpu.strided_load %arg10[%c1, %c0_17] {strides = array<i32: 2, 1>} : memref<128x64xf32, #tpu.memory_space<vmem>>, vector<63x64xf32>
    %17 = arith.maximumf %15, %16 : vector<63x64xf32>
    %c2 = arith.constant 2 : index
    %c0_18 = arith.constant 0 : index
    %18 = tpu.strided_load %arg10[%c2, %c0_18] {strides = array<i32: 2, 1>} : memref<128x64xf32, #tpu.memory_space<vmem>>, vector<63x64xf32>
    %19 = arith.maximumf %17, %18 : vector<63x64xf32>
    %cst_19 = arith.constant 0.000000e+00 : f32
    %20 = vector.broadcast %cst_19 : f32 to vector<63x64xf32>
    %21 = arith.maximumf %19, %20 : vector<63x64xf32>
    %c8_20 = arith.constant 8 : index
    %c0_21 = arith.constant 0 : index
    %22 = vector.load %arg9[%c8_20, %c0_21] : memref<144x64xf32, #tpu.memory_space<vmem>>, vector<63x64xf32>
    tpu.vector_store %arg9[%c8_20, %c0_21], %21 {strides = array<i32>} : memref<144x64xf32, #tpu.memory_space<vmem>>, vector<63x64xf32>,
    %cst_22 = arith.constant 0.000000e+00 : f32
    %23 = vector.broadcast %cst_22 : f32 to vector<1x64xf32>
    %c71 = arith.constant 71 : index
    %c0_23 = arith.constant 0 : index
    %24 = vector.load %arg9[%c71, %c0_23] : memref<144x64xf32, #tpu.memory_space<vmem>>, vector<1x64xf32>
    tpu.vector_store %arg9[%c71, %c0_23], %23 {strides = array<i32>} : memref<144x64xf32, #tpu.memory_space<vmem>>, vector<1x64xf32>,
    %c7_24 = arith.constant 7 : index
    %c0_25 = arith.constant 0 : index
    %25 = vector.load %arg9[%c7_24, %c0_25] : memref<144x64xf32, #tpu.memory_space<vmem>>, vector<63x64xf32>
    %c9_26 = arith.constant 9 : index
    %c0_27 = arith.constant 0 : index
    %26 = vector.load %arg9[%c9_26, %c0_27] : memref<144x64xf32, #tpu.memory_space<vmem>>, vector<63x64xf32>
    %27 = tpu.concatenate %25, %21, %26 in 1 : vector<63x64xf32>, vector<63x64xf32>, vector<63x64xf32> -> vector<63x192xf32>
    %c0_28 = arith.constant 0 : index
    %c0_29 = arith.constant 0 : index
    %c0_30 = arith.constant 0 : index
    %28 = vector.load %arg4[%c0_28, %c0_29, %c0_30] : memref<5x192x64xf32, #tpu.memory_space<vmem>>, vector<1x192x64xf32>
    %29 = vector.shape_cast %28 : vector<1x192x64xf32> to vector<192x64xf32>
    %c0_31 = arith.constant 0 : index
    %c0_32 = arith.constant 0 : index
    %c0_33 = arith.constant 0 : index
    %30 = vector.load %arg5[%c0_31, %c0_32, %c0_33] : memref<5x1x64xf32, #tpu.memory_space<vmem>>, vector<1x1x64xf32>
    %31 = vector.shape_cast %30 : vector<1x1x64xf32> to vector<1x64xf32>
    %cst_34 = arith.constant dense<0.000000e+00> : vector<63x64xf32>
    %32 = tpu.matmul %27, %29, %cst_34 {dimension_numbers = #tpu.dot_dimension_numbers<[1], [0], [0], [1], [0, 0, 1, 1], [], []>} : vector<63x192xf32>, vector<192x64xf32>, vector<63x64xf32> -> vector<63x64xf32>
    %33 = vector.broadcast %31 : vector<1x64xf32> to vector<63x64xf32>
    %34 = arith.addf %32, %33 : vector<63x64xf32>
    %c0_35 = arith.constant 0 : index
    %c0_36 = arith.constant 0 : index
    %35 = vector.load %arg10[%c0_35, %c0_36] : memref<128x64xf32, #tpu.memory_space<vmem>>, vector<63x64xf32>
    tpu.vector_store %arg10[%c0_35, %c0_36], %34 {strides = array<i32>} : memref<128x64xf32, #tpu.memory_space<vmem>>, vector<63x64xf32>,
    %c0_37 = arith.constant 0 : index
    %c0_38 = arith.constant 0 : index
    %36 = tpu.strided_load %arg10[%c0_37, %c0_38] {strides = array<i32: 2, 1>} : memref<128x64xf32, #tpu.memory_space<vmem>>, vector<31x64xf32>
    %c1_39 = arith.constant 1 : index
    %c0_40 = arith.constant 0 : index
    %37 = tpu.strided_load %arg10[%c1_39, %c0_40] {strides = array<i32: 2, 1>} : memref<128x64xf32, #tpu.memory_space<vmem>>, vector<31x64xf32>
    %38 = arith.maximumf %36, %37 : vector<31x64xf32>
    %cst_41 = arith.constant 0.000000e+00 : f32
    %39 = vector.broadcast %cst_41 : f32 to vector<31x64xf32>
    %40 = arith.maximumf %38, %39 : vector<31x64xf32>
    %c8_42 = arith.constant 8 : index
    %c0_43 = arith.constant 0 : index
    %41 = vector.load %arg9[%c8_42, %c0_43] : memref<144x64xf32, #tpu.memory_space<vmem>>, vector<31x64xf32>
    tpu.vector_store %arg9[%c8_42, %c0_43], %40 {strides = array<i32>} : memref<144x64xf32, #tpu.memory_space<vmem>>, vector<31x64xf32>,
    %cst_44 = arith.constant 0.000000e+00 : f32
    %42 = vector.broadcast %cst_44 : f32 to vector<1x64xf32>
    %c39 = arith.constant 39 : index
    %c0_45 = arith.constant 0 : index
    %43 = vector.load %arg9[%c39, %c0_45] : memref<144x64xf32, #tpu.memory_space<vmem>>, vector<1x64xf32>
    tpu.vector_store %arg9[%c39, %c0_45], %42 {strides = array<i32>} : memref<144x64xf32, #tpu.memory_space<vmem>>, vector<1x64xf32>,
    %c7_46 = arith.constant 7 : index
    %c0_47 = arith.constant 0 : index
    %44 = vector.load %arg9[%c7_46, %c0_47] : memref<144x64xf32, #tpu.memory_space<vmem>>, vector<31x64xf32>
    %c9_48 = arith.constant 9 : index
    %c0_49 = arith.constant 0 : index
    %45 = vector.load %arg9[%c9_48, %c0_49] : memref<144x64xf32, #tpu.memory_space<vmem>>, vector<31x64xf32>
    %46 = tpu.concatenate %44, %40, %45 in 1 : vector<31x64xf32>, vector<31x64xf32>, vector<31x64xf32> -> vector<31x192xf32>
    %c1_50 = arith.constant 1 : index
    %c0_51 = arith.constant 0 : index
    %c0_52 = arith.constant 0 : index
    %47 = vector.load %arg4[%c1_50, %c0_51, %c0_52] : memref<5x192x64xf32, #tpu.memory_space<vmem>>, vector<1x192x64xf32>
    %48 = vector.shape_cast %47 : vector<1x192x64xf32> to vector<192x64xf32>
    %c1_53 = arith.constant 1 : index
    %c0_54 = arith.constant 0 : index
    %c0_55 = arith.constant 0 : index
    %49 = vector.load %arg5[%c1_53, %c0_54, %c0_55] : memref<5x1x64xf32, #tpu.memory_space<vmem>>, vector<1x1x64xf32>
    %50 = vector.shape_cast %49 : vector<1x1x64xf32> to vector<1x64xf32>
    %cst_56 = arith.constant dense<0.000000e+00> : vector<31x64xf32>
    %51 = tpu.matmul %46, %48, %cst_56 {dimension_numbers = #tpu.dot_dimension_numbers<[1], [0], [0], [1], [0, 0, 1, 1], [], []>} : vector<31x192xf32>, vector<192x64xf32>, vector<31x64xf32> -> vector<31x64xf32>
    %52 = vector.broadcast %50 : vector<1x64xf32> to vector<31x64xf32>
    %53 = arith.addf %51, %52 : vector<31x64xf32>
    %c0_57 = arith.constant 0 : index
    %c0_58 = arith.constant 0 : index
    %54 = vector.load %arg10[%c0_57, %c0_58] : memref<128x64xf32, #tpu.memory_space<vmem>>, vector<31x64xf32>
    tpu.vector_store %arg10[%c0_57, %c0_58], %53 {strides = array<i32>} : memref<128x64xf32, #tpu.memory_space<vmem>>, vector<31x64xf32>,
    %c0_59 = arith.constant 0 : index
    %c0_60 = arith.constant 0 : index
    %55 = tpu.strided_load %arg10[%c0_59, %c0_60] {strides = array<i32: 2, 1>} : memref<128x64xf32, #tpu.memory_space<vmem>>, vector<15x64xf32>
    %c1_61 = arith.constant 1 : index
    %c0_62 = arith.constant 0 : index
    %56 = tpu.strided_load %arg10[%c1_61, %c0_62] {strides = array<i32: 2, 1>} : memref<128x64xf32, #tpu.memory_space<vmem>>, vector<15x64xf32>
    %57 = arith.maximumf %55, %56 : vector<15x64xf32>
    %cst_63 = arith.constant 0.000000e+00 : f32
    %58 = vector.broadcast %cst_63 : f32 to vector<15x64xf32>
    %59 = arith.maximumf %57, %58 : vector<15x64xf32>
    %c8_64 = arith.constant 8 : index
    %c0_65 = arith.constant 0 : index
    %60 = vector.load %arg9[%c8_64, %c0_65] : memref<144x64xf32, #tpu.memory_space<vmem>>, vector<15x64xf32>
    tpu.vector_store %arg9[%c8_64, %c0_65], %59 {strides = array<i32>} : memref<144x64xf32, #tpu.memory_space<vmem>>, vector<15x64xf32>,
    %cst_66 = arith.constant 0.000000e+00 : f32
    %61 = vector.broadcast %cst_66 : f32 to vector<1x64xf32>
    %c23 = arith.constant 23 : index
    %c0_67 = arith.constant 0 : index
    %62 = vector.load %arg9[%c23, %c0_67] : memref<144x64xf32, #tpu.memory_space<vmem>>, vector<1x64xf32>
    tpu.vector_store %arg9[%c23, %c0_67], %61 {strides = array<i32>} : memref<144x64xf32, #tpu.memory_space<vmem>>, vector<1x64xf32>,
    %c7_68 = arith.constant 7 : index
    %c0_69 = arith.constant 0 : index
    %63 = vector.load %arg9[%c7_68, %c0_69] : memref<144x64xf32, #tpu.memory_space<vmem>>, vector<15x64xf32>
    %c9_70 = arith.constant 9 : index
    %c0_71 = arith.constant 0 : index
    %64 = vector.load %arg9[%c9_70, %c0_71] : memref<144x64xf32, #tpu.memory_space<vmem>>, vector<15x64xf32>
    %65 = tpu.concatenate %63, %59, %64 in 1 : vector<15x64xf32>, vector<15x64xf32>, vector<15x64xf32> -> vector<15x192xf32>
    %c2_72 = arith.constant 2 : index
    %c0_73 = arith.constant 0 : index
    %c0_74 = arith.constant 0 : index
    %66 = vector.load %arg4[%c2_72, %c0_73, %c0_74] : memref<5x192x64xf32, #tpu.memory_space<vmem>>, vector<1x192x64xf32>
    %67 = vector.shape_cast %66 : vector<1x192x64xf32> to vector<192x64xf32>
    %c2_75 = arith.constant 2 : index
    %c0_76 = arith.constant 0 : index
    %c0_77 = arith.constant 0 : index
    %68 = vector.load %arg5[%c2_75, %c0_76, %c0_77] : memref<5x1x64xf32, #tpu.memory_space<vmem>>, vector<1x1x64xf32>
    %69 = vector.shape_cast %68 : vector<1x1x64xf32> to vector<1x64xf32>
    %cst_78 = arith.constant dense<0.000000e+00> : vector<15x64xf32>
    %70 = tpu.matmul %65, %67, %cst_78 {dimension_numbers = #tpu.dot_dimension_numbers<[1], [0], [0], [1], [0, 0, 1, 1], [], []>} : vector<15x192xf32>, vector<192x64xf32>, vector<15x64xf32> -> vector<15x64xf32>
    %71 = vector.broadcast %69 : vector<1x64xf32> to vector<15x64xf32>
    %72 = arith.addf %70, %71 : vector<15x64xf32>
    %c0_79 = arith.constant 0 : index
    %c0_80 = arith.constant 0 : index
    %73 = vector.load %arg10[%c0_79, %c0_80] : memref<128x64xf32, #tpu.memory_space<vmem>>, vector<15x64xf32>
    tpu.vector_store %arg10[%c0_79, %c0_80], %72 {strides = array<i32>} : memref<128x64xf32, #tpu.memory_space<vmem>>, vector<15x64xf32>,
    %c0_81 = arith.constant 0 : index
    %c0_82 = arith.constant 0 : index
    %74 = tpu.strided_load %arg10[%c0_81, %c0_82] {strides = array<i32: 2, 1>} : memref<128x64xf32, #tpu.memory_space<vmem>>, vector<7x64xf32>
    %c1_83 = arith.constant 1 : index
    %c0_84 = arith.constant 0 : index
    %75 = tpu.strided_load %arg10[%c1_83, %c0_84] {strides = array<i32: 2, 1>} : memref<128x64xf32, #tpu.memory_space<vmem>>, vector<7x64xf32>
    %76 = arith.maximumf %74, %75 : vector<7x64xf32>
    %cst_85 = arith.constant 0.000000e+00 : f32
    %77 = vector.broadcast %cst_85 : f32 to vector<7x64xf32>
    %78 = arith.maximumf %76, %77 : vector<7x64xf32>
    %c8_86 = arith.constant 8 : index
    %c0_87 = arith.constant 0 : index
    %79 = vector.load %arg9[%c8_86, %c0_87] : memref<144x64xf32, #tpu.memory_space<vmem>>, vector<7x64xf32>
    tpu.vector_store %arg9[%c8_86, %c0_87], %78 {strides = array<i32>} : memref<144x64xf32, #tpu.memory_space<vmem>>, vector<7x64xf32>,
    %cst_88 = arith.constant 0.000000e+00 : f32
    %80 = vector.broadcast %cst_88 : f32 to vector<1x64xf32>
    %c15 = arith.constant 15 : index
    %c0_89 = arith.constant 0 : index
    %81 = vector.load %arg9[%c15, %c0_89] : memref<144x64xf32, #tpu.memory_space<vmem>>, vector<1x64xf32>
    tpu.vector_store %arg9[%c15, %c0_89], %80 {strides = array<i32>} : memref<144x64xf32, #tpu.memory_space<vmem>>, vector<1x64xf32>,
    %c7_90 = arith.constant 7 : index
    %c0_91 = arith.constant 0 : index
    %82 = vector.load %arg9[%c7_90, %c0_91] : memref<144x64xf32, #tpu.memory_space<vmem>>, vector<7x64xf32>
    %c9_92 = arith.constant 9 : index
    %c0_93 = arith.constant 0 : index
    %83 = vector.load %arg9[%c9_92, %c0_93] : memref<144x64xf32, #tpu.memory_space<vmem>>, vector<7x64xf32>
    %84 = tpu.concatenate %82, %78, %83 in 1 : vector<7x64xf32>, vector<7x64xf32>, vector<7x64xf32> -> vector<7x192xf32>
    %c3 = arith.constant 3 : index
    %c0_94 = arith.constant 0 : index
    %c0_95 = arith.constant 0 : index
    %85 = vector.load %arg4[%c3, %c0_94, %c0_95] : memref<5x192x64xf32, #tpu.memory_space<vmem>>, vector<1x192x64xf32>
    %86 = vector.shape_cast %85 : vector<1x192x64xf32> to vector<192x64xf32>
    %c3_96 = arith.constant 3 : index
    %c0_97 = arith.constant 0 : index
    %c0_98 = arith.constant 0 : index
    %87 = vector.load %arg5[%c3_96, %c0_97, %c0_98] : memref<5x1x64xf32, #tpu.memory_space<vmem>>, vector<1x1x64xf32>
    %88 = vector.shape_cast %87 : vector<1x1x64xf32> to vector<1x64xf32>
    %cst_99 = arith.constant dense<0.000000e+00> : vector<7x64xf32>
    %89 = tpu.matmul %84, %86, %cst_99 {dimension_numbers = #tpu.dot_dimension_numbers<[1], [0], [0], [1], [0, 0, 1, 1], [], []>} : vector<7x192xf32>, vector<192x64xf32>, vector<7x64xf32> -> vector<7x64xf32>
    %90 = vector.broadcast %88 : vector<1x64xf32> to vector<7x64xf32>
    %91 = arith.addf %89, %90 : vector<7x64xf32>
    %c0_100 = arith.constant 0 : index
    %c0_101 = arith.constant 0 : index
    %92 = vector.load %arg10[%c0_100, %c0_101] : memref<128x64xf32, #tpu.memory_space<vmem>>, vector<7x64xf32>
    tpu.vector_store %arg10[%c0_100, %c0_101], %91 {strides = array<i32>} : memref<128x64xf32, #tpu.memory_space<vmem>>, vector<7x64xf32>,
    %c0_102 = arith.constant 0 : index
    %c0_103 = arith.constant 0 : index
    %93 = tpu.strided_load %arg10[%c0_102, %c0_103] {strides = array<i32: 2, 1>} : memref<128x64xf32, #tpu.memory_space<vmem>>, vector<3x64xf32>
    %c1_104 = arith.constant 1 : index
    %c0_105 = arith.constant 0 : index
    %94 = tpu.strided_load %arg10[%c1_104, %c0_105] {strides = array<i32: 2, 1>} : memref<128x64xf32, #tpu.memory_space<vmem>>, vector<3x64xf32>
    %95 = arith.maximumf %93, %94 : vector<3x64xf32>
    %cst_106 = arith.constant 0.000000e+00 : f32
    %96 = vector.broadcast %cst_106 : f32 to vector<3x64xf32>
    %97 = arith.maximumf %95, %96 : vector<3x64xf32>
    %c8_107 = arith.constant 8 : index
    %c0_108 = arith.constant 0 : index
    %98 = vector.load %arg9[%c8_107, %c0_108] : memref<144x64xf32, #tpu.memory_space<vmem>>, vector<3x64xf32>
    tpu.vector_store %arg9[%c8_107, %c0_108], %97 {strides = array<i32>} : memref<144x64xf32, #tpu.memory_space<vmem>>, vector<3x64xf32>,
    %cst_109 = arith.constant 0.000000e+00 : f32
    %99 = vector.broadcast %cst_109 : f32 to vector<1x64xf32>
    %c11 = arith.constant 11 : index
    %c0_110 = arith.constant 0 : index
    %100 = vector.load %arg9[%c11, %c0_110] : memref<144x64xf32, #tpu.memory_space<vmem>>, vector<1x64xf32>
    tpu.vector_store %arg9[%c11, %c0_110], %99 {strides = array<i32>} : memref<144x64xf32, #tpu.memory_space<vmem>>, vector<1x64xf32>,
    %c7_111 = arith.constant 7 : index
    %c0_112 = arith.constant 0 : index
    %101 = vector.load %arg9[%c7_111, %c0_112] : memref<144x64xf32, #tpu.memory_space<vmem>>, vector<3x64xf32>
    %c9_113 = arith.constant 9 : index
    %c0_114 = arith.constant 0 : index
    %102 = vector.load %arg9[%c9_113, %c0_114] : memref<144x64xf32, #tpu.memory_space<vmem>>, vector<3x64xf32>
    %103 = tpu.concatenate %101, %97, %102 in 1 : vector<3x64xf32>, vector<3x64xf32>, vector<3x64xf32> -> vector<3x192xf32>
    %c4 = arith.constant 4 : index
    %c0_115 = arith.constant 0 : index
    %c0_116 = arith.constant 0 : index
    %104 = vector.load %arg4[%c4, %c0_115, %c0_116] : memref<5x192x64xf32, #tpu.memory_space<vmem>>, vector<1x192x64xf32>
    %105 = vector.shape_cast %104 : vector<1x192x64xf32> to vector<192x64xf32>
    %c4_117 = arith.constant 4 : index
    %c0_118 = arith.constant 0 : index
    %c0_119 = arith.constant 0 : index
    %106 = vector.load %arg5[%c4_117, %c0_118, %c0_119] : memref<5x1x64xf32, #tpu.memory_space<vmem>>, vector<1x1x64xf32>
    %107 = vector.shape_cast %106 : vector<1x1x64xf32> to vector<1x64xf32>
    %cst_120 = arith.constant dense<0.000000e+00> : vector<3x64xf32>
    %108 = tpu.matmul %103, %105, %cst_120 {dimension_numbers = #tpu.dot_dimension_numbers<[1], [0], [0], [1], [0, 0, 1, 1], [], []>} : vector<3x192xf32>, vector<192x64xf32>, vector<3x64xf32> -> vector<3x64xf32>
    %109 = vector.broadcast %107 : vector<1x64xf32> to vector<3x64xf32>
    %110 = arith.addf %108, %109 : vector<3x64xf32>
    %c0_121 = arith.constant 0 : index
    %c0_122 = arith.constant 0 : index
    %111 = vector.load %arg10[%c0_121, %c0_122] : memref<128x64xf32, #tpu.memory_space<vmem>>, vector<3x64xf32>
    tpu.vector_store %arg10[%c0_121, %c0_122], %110 {strides = array<i32>} : memref<128x64xf32, #tpu.memory_space<vmem>>, vector<3x64xf32>,
    %c0_123 = arith.constant 0 : index
    %c0_124 = arith.constant 0 : index
    %112 = tpu.strided_load %arg10[%c0_123, %c0_124] {strides = array<i32: 2, 1>} : memref<128x64xf32, #tpu.memory_space<vmem>>, vector<1x64xf32>
    %c1_125 = arith.constant 1 : index
    %c0_126 = arith.constant 0 : index
    %113 = tpu.strided_load %arg10[%c1_125, %c0_126] {strides = array<i32: 2, 1>} : memref<128x64xf32, #tpu.memory_space<vmem>>, vector<1x64xf32>
    %114 = arith.maximumf %112, %113 : vector<1x64xf32>
    %cst_127 = arith.constant 0.000000e+00 : f32
    %115 = vector.broadcast %cst_127 : f32 to vector<1x64xf32>
    %116 = arith.maximumf %114, %115 : vector<1x64xf32>
    %cst_128 = arith.constant dense<0xFF800000> : vector<64xf32>
    %117 = vector.multi_reduction <maximumf>, %116, %cst_128 [0] : vector<1x64xf32> to vector<64xf32>
    %118 = vector.shape_cast %117 : vector<64xf32> to vector<1x64xf32>
    %c0_129 = arith.constant 0 : index
    %c0_130 = arith.constant 0 : index
    %119 = vector.load %arg6[%c0_129, %c0_130] : memref<64x64xf32, #tpu.memory_space<vmem>>, vector<64x64xf32>
    %cst_131 = arith.constant dense<0.000000e+00> : vector<1x64xf32>
    %120 = tpu.matmul %118, %119, %cst_131 {dimension_numbers = #tpu.dot_dimension_numbers<[1], [0], [0], [1], [0, 0, 1, 1], [], []>} : vector<1x64xf32>, vector<64x64xf32>, vector<1x64xf32> -> vector<1x64xf32>
    %c0_132 = arith.constant 0 : index
    %c0_133 = arith.constant 0 : index
    %121 = vector.load %arg7[%c0_132, %c0_133] : memref<1x64xf32, #tpu.memory_space<vmem>>, vector<1x64xf32>
    %122 = arith.addf %120, %121 : vector<1x64xf32>
    %123 = math.tanh %122 : vector<1x64xf32>
    %c0_134 = arith.constant 0 : index
    %c0_135 = arith.constant 0 : index
    %124 = vector.load %arg8[%c0_134, %c0_135] : memref<1x64xf32, #tpu.memory_space<vmem>>, vector<1x64xf32>
    tpu.vector_store %arg8[%c0_134, %c0_135], %123 {strides = array<i32>} : memref<1x64xf32, #tpu.memory_space<vmem>>, vector<1x64xf32>,
    return
  }
  func.func @transform_0(%arg0: i32) -> (i32, i32) {
    %c0_i32 = arith.constant 0 : i32
    %c0_i32_0 = arith.constant 0 : i32
    %c0_i32_1 = arith.constant 0 : i32
    return %c0_i32, %c0_i32_0 : i32, i32
  }
  func.func @transform_1(%arg0: i32) -> (i32, i32) {
    %c0_i32 = arith.constant 0 : i32
    %c0_i32_0 = arith.constant 0 : i32
    %c0_i32_1 = arith.constant 0 : i32
    return %c0_i32, %c0_i32_0 : i32, i32
  }
  func.func @transform_2(%arg0: i32) -> (i32, i32) {
    %c0_i32 = arith.constant 0 : i32
    %c0_i32_0 = arith.constant 0 : i32
    %c0_i32_1 = arith.constant 0 : i32
    return %c0_i32, %c0_i32_0 : i32, i32
  }
  func.func @transform_3(%arg0: i32) -> (i32, i32, i32) {
    %c0_i32 = arith.constant 0 : i32
    %c0_i32_0 = arith.constant 0 : i32
    %c0_i32_1 = arith.constant 0 : i32
    %c0_i32_2 = arith.constant 0 : i32
    return %c0_i32, %c0_i32_0, %c0_i32_1 : i32, i32, i32
  }
  func.func @transform_4(%arg0: i32) -> (i32, i32, i32) {
    %c0_i32 = arith.constant 0 : i32
    %c0_i32_0 = arith.constant 0 : i32
    %c0_i32_1 = arith.constant 0 : i32
    %c0_i32_2 = arith.constant 0 : i32
    return %c0_i32, %c0_i32_0, %c0_i32_1 : i32, i32, i32
  }
  func.func @transform_5(%arg0: i32) -> (i32, i32) {
    %c0_i32 = arith.constant 0 : i32
    %c0_i32_0 = arith.constant 0 : i32
    %c0_i32_1 = arith.constant 0 : i32
    return %c0_i32, %c0_i32_0 : i32, i32
  }
  func.func @transform_6(%arg0: i32) -> (i32, i32) {
    %c0_i32 = arith.constant 0 : i32
    %c0_i32_0 = arith.constant 0 : i32
    %c0_i32_1 = arith.constant 0 : i32
    return %c0_i32, %c0_i32_0 : i32, i32
  }
  func.func @transform_7(%arg0: i32) -> (i32, i32) {
    %c0_i32 = arith.constant 0 : i32
    %c0_i32_0 = arith.constant 0 : i32
    %c0_i32_1 = arith.constant 0 : i32
    return %c0_i32, %c0_i32_0 : i32, i32
  }
}

</mosaic_0001>

<bundles_post_ra>
// kernel: short_term_encoder.1
= control target key start
LH: loop header
LB: loop body
LE: loop exit
PB: predicated region body
PF: predicated region fallthrough
CT: control target
= control target key end

     0   :  { %vm44_vm0 = vcmask 523264   ;;  %vm26_vm1 = vcmask 516096   ;;  %v1777_v3 = vmov 0.0|0.0   ;;  %v1778_v4 = vmov 0.0   ;;  %s1779_s30 = smov 64   ;;  %s2626_s0 = inlined_call_operand.vmem [shape: f32[128,64], index: 0, kind: input, shape index: {}]   ;;  %s2627_s1 = inlined_call_operand.vmem [shape: f32[192,64], index: 1, kind: input, shape index: {}]   ;;  %s2628_s3 = inlined_call_operand.vmem [shape: f32[5,192,64], index: 3, kind: input, shape index: {}]   ;;  %s2629_s2 = inlined_call_operand.vmem [shape: f32[1,64], index: 2, kind: input, shape index: {}]   ;;  %s2630_s4 = inlined_call_operand.vmem [shape: f32[5,1,64], index: 4, kind: input, shape index: {}]   ;;  %s2631_s5 = inlined_call_operand.vmem [shape: f32[64,64], index: 5, kind: input, shape index: {}]   ;;  %s2632_s6 = inlined_call_operand.vmem [shape: f32[1,64], index: 6, kind: input, shape index: {}]   ;;  %s2633_s7 = inlined_call_operand.vmem [shape: f32[1,64], index: 7, kind: output, shape index: {}]  }
   0x1   :  { %v28_v0 = vld [vmem:[%s2626_s0] sm:$0xff]  ;;  %v29_v1 = vld [vmem:[%s2626_s0 + $0x8] sm:$0xff]  ;;  %v30_v2 = vld [vmem:[%s2626_s0 + $0x10] sm:$0xff]  ;;  %1543 = vmatprep.subr.bf16.mxu0 %v1777_v3  ;;  %27 = vst.msk [vmem:[#allocation2 + $0x7] sm:$0x1] %vm26_vm1, %v1778_v4  ;;  %1579 = vmatprep.subr.bf16.mxu1 %v1777_v3  ;;  %vm492_vm2 = vcmask 522240  }
   0x2   :  { %61 = vst.msk [vmem:[#allocation2 + $0x88] sm:$0x1] %vm26_vm1, %v1778_v4  ;;  %110 = vrot.lane.b32.xlu0 %v28_v0, %s1779_s30  ;;  %114 = vrot.lane.b32.xlu1 %v30_v2, %s1779_s30  ;;  %v31_v5 = vld [vmem:[%s2626_s0 + $0x18] sm:$0xff]  ;;  %v32_v6 = vld [vmem:[%s2626_s0 + $0x20] sm:$0xff]  ;;  %vm1167_vm3 = vcmask 518144   ;;  %vm1780_vm4 = vmmov 0  }
   0x3   :  { %45 = vst.msk [vmem:[#allocation2 + $0x8] sm:$0xff] %vm44_vm0, %v28_v0  ;;  %46 = vst.msk [vmem:[#allocation2 + $0x10] sm:$0xff] %vm44_vm0, %v29_v1  ;;  %v33_v7 = vld [vmem:[%s2626_s0 + $0x28] sm:$0xff]  ;;  %v34_v8 = vld [vmem:[%s2626_s0 + $0x30] sm:$0xff] }
   0x4   :  { %47 = vst.msk [vmem:[#allocation2 + $0x18] sm:$0xff] %vm44_vm0, %v30_v2  ;;  %48 = vst.msk [vmem:[#allocation2 + $0x20] sm:$0xff] %vm44_vm0, %v31_v5  ;;  %v35_v9 = vld [vmem:[%s2626_s0 + $0x38] sm:$0xff]  ;;  %v36_v10 = vld [vmem:[%s2626_s0 + $0x40] sm:$0xff] }
   0x5   :  { %49 = vst.msk [vmem:[#allocation2 + $0x28] sm:$0xff] %vm44_vm0, %v32_v6  ;;  %50 = vst.msk [vmem:[#allocation2 + $0x30] sm:$0xff] %vm44_vm0, %v33_v7  ;;  %v37_v11 = vld [vmem:[%s2626_s0 + $0x48] sm:$0xff]  ;;  %v38_v12 = vld [vmem:[%s2626_s0 + $0x50] sm:$0xff] }
   0x6   :  { %51 = vst.msk [vmem:[#allocation2 + $0x38] sm:$0xff] %vm44_vm0, %v34_v8  ;;  %52 = vst.msk [vmem:[#allocation2 + $0x40] sm:$0xff] %vm44_vm0, %v35_v9  ;;  %v39_v13 = vld [vmem:[%s2626_s0 + $0x58] sm:$0xff]  ;;  %v40_v14 = vld [vmem:[%s2626_s0 + $0x60] sm:$0xff]  ;;  %112 = vrot.lane.b32.xlu0 %v29_v1, %s1779_s30  ;;  %116 = vrot.lane.b32.xlu1 %v31_v5, %s1779_s30 }
   0x7   :  { %53 = vst.msk [vmem:[#allocation2 + $0x48] sm:$0xff] %vm44_vm0, %v36_v10  ;;  %54 = vst.msk [vmem:[#allocation2 + $0x50] sm:$0xff] %vm44_vm0, %v37_v11  ;;  %v41_v15 = vld [vmem:[%s2626_s0 + $0x68] sm:$0xff]  ;;  %v42_v16 = vld [vmem:[%s2626_s0 + $0x70] sm:$0xff] }
   0x8   :  { %55 = vst.msk [vmem:[#allocation2 + $0x58] sm:$0xff] %vm44_vm0, %v38_v12  ;;  %56 = vst.msk [vmem:[#allocation2 + $0x60] sm:$0xff] %vm44_vm0, %v39_v13  ;;  %v43_v17 = vld [vmem:[%s2626_s0 + $0x78] sm:$0xff]  ;;  %v174_v18 = vld [vmem:[%s2627_s1] sm:$0xff] }
   0x9   :  { %57 = vst.msk [vmem:[#allocation2 + $0x68] sm:$0xff] %vm44_vm0, %v40_v14  ;;  %58 = vst.msk [vmem:[#allocation2 + $0x70] sm:$0xff] %vm44_vm0, %v41_v15  ;;  %v175_v19 = vld [vmem:[%s2627_s1 + $0x8] sm:$0xff]  ;;  %v176_v21 = vld [vmem:[%s2627_s1 + $0x10] sm:$0xff] }
   0xa   :  { %59 = vst.msk [vmem:[#allocation2 + $0x78] sm:$0xff] %vm44_vm0, %v42_v16  ;;  %60 = vst.msk [vmem:[#allocation2 + $0x80] sm:$0xff] %vm44_vm0, %v43_v17  ;;  %v1544_v20 = vpack.c.bf16 %v175_v19, %v174_v18  ;;  %v177_v22 = vld [vmem:[%s2627_s1 + $0x18] sm:$0xff]  ;;  %118 = vrot.lane.b32.xlu0 %v32_v6, %s1779_s30  ;;  %120 = vrot.lane.b32.xlu1 %v33_v7, %s1779_s30  ;;  %v78_v23 = vld [vmem:[#allocation2 + $0x9] sm:$0xff] }
   0xb   :  { %v1547_v24 = vpack.c.bf16 %v177_v22, %v176_v21  ;;  %1377 = vmatprep.mubr.msk.f32.mxu0 %vm44_vm0, %v78_v23  ;;  %v178_v25 = vld [vmem:[%s2627_s1 + $0x20] sm:$0xff]  ;;  %v179_v26 = vld [vmem:[%s2627_s1 + $0x28] sm:$0xff]  ;;  %v180_v28 = vld [vmem:[%s2627_s1 + $0x30] sm:$0xff] }
   0xc   :  { %1545 = vmatpush1.bf16.msra.mxu0 %v1544_v20  ;;  %v1550_v27 = vpack.c.bf16 %v179_v26, %v178_v25  ;;  %v181_v29 = vld [vmem:[%s2627_s1 + $0x38] sm:$0xff]  ;;  %v182_v31 = vld [vmem:[%s2627_s1 + $0x40] sm:$0xff]  ;;  %v183_v32 = vld [vmem:[%s2627_s1 + $0x48] sm:$0xff] }
   0xd   :  { %1546 = vmatprep.subr.bf16.mxu0 %v1777_v3  ;;  %v1553_v30 = vpack.c.bf16 %v181_v29, %v180_v28  ;;  %v1556_v35 = vpack.c.bf16 %v183_v32, %v182_v31  ;;  %v184_v36 = vld [vmem:[%s2627_s1 + $0x50] sm:$0xff]  ;;  %v185_v37 = vld [vmem:[%s2627_s1 + $0x58] sm:$0xff]  ;;  %v186_v39 = vld [vmem:[%s2627_s1 + $0x60] sm:$0xff] }
   0xe   :  { %122 = vrot.lane.b32.xlu0 %v34_v8, %s1779_s30  ;;  %124 = vrot.lane.b32.xlu1 %v35_v9, %s1779_s30  ;;  %v1935_v33 = vld [vmem:[#allocation2 + $0x41] sm:$0xff]  ;;  %v1559_v38 = vpack.c.bf16 %v185_v37, %v184_v36  ;;  %v188_v42 = vld [vmem:[%s2627_s1 + $0x70] sm:$0xff]  ;;  %v189_v43 = vld [vmem:[%s2627_s1 + $0x78] sm:$0xff] }
   0xf   :  { %v1937_v34 = vld [vmem:[#allocation2 + $0x47] sm:$0xff]  ;;  %v1565_v44 = vpack.c.bf16 %v189_v43, %v188_v42  ;;  %v192_v48 = vld [vmem:[%s2627_s1 + $0x90] sm:$0xff]  ;;  %v193_v49 = vld [vmem:[%s2627_s1 + $0x98] sm:$0xff] }
  0x10   :  { %1548 = vmatpush1.bf16.msra.mxu0 %v1547_v24  ;;  %494 = vst.msk [vmem:[#allocation2 + $0x47] sm:$0x1] %vm26_vm1, %v1778_v4  ;;  %v187_v40 = vld [vmem:[%s2627_s1 + $0x68] sm:$0xff]  ;;  %v190_v45 = vld [vmem:[%s2627_s1 + $0x80] sm:$0xff]  ;;  %v1571_v50 = vpack.c.bf16 %v193_v49, %v192_v48  ;;  %v196_v54 = vld [vmem:[%s2627_s1 + $0xb0] sm:$0xff] }
  0x11   :  { %1549 = vmatprep.subr.bf16.mxu0 %v1777_v3  ;;  %v1562_v41 = vpack.c.bf16 %v187_v40, %v186_v39  ;;  %v191_v46 = vld [vmem:[%s2627_s1 + $0x88] sm:$0xff]  ;;  %v194_v51 = vld [vmem:[%s2627_s1 + $0xa0] sm:$0xff]  ;;  %v197_v55 = vld [vmem:[%s2627_s1 + $0xb8] sm:$0xff] }
  0x12   :  { %126 = vrot.lane.b32.xlu0 %v36_v10, %s1779_s30  ;;  %128 = vrot.lane.b32.xlu1 %v37_v11, %s1779_s30  ;;  %v1568_v47 = vpack.c.bf16 %v191_v46, %v190_v45  ;;  %v195_v52 = vld [vmem:[%s2627_s1 + $0xa8] sm:$0xff]  ;;  %v1577_v56 = vpack.c.bf16 %v197_v55, %v196_v54  ;;  %v79_v59 = vld [vmem:[#allocation2 + $0x11] sm:$0xff]  ;;  %v80_v0 = vld [vmem:[#allocation2 + $0x19] sm:$0xff] }
  0x13   :  { %v1574_v53 = vpack.c.bf16 %v195_v52, %v194_v51  ;;  %v62_v57 = vld [vmem:[#allocation2 + $0x7] sm:$0xff]  ;;  %v63_v61 = vld [vmem:[#allocation2 + $0xf] sm:$0xff]  ;;  %v64_v1 = vld [vmem:[#allocation2 + $0x17] sm:$0xff] }
  0x14   :  { %1551 = vmatpush1.bf16.msra.mxu0 %v1550_v27  ;;  %v81_v7 = vld [vmem:[#allocation2 + $0x21] sm:$0xff]  ;;  %v82_v11 = vld [vmem:[#allocation2 + $0x29] sm:$0xff]  ;;  %v84_v19 = vld [vmem:[#allocation2 + $0x39] sm:$0xff] }
  0x15   :  { %1552 = vmatprep.subr.bf16.mxu0 %v1777_v3  ;;  %v65_v8 = vld [vmem:[#allocation2 + $0x1f] sm:$0xff]  ;;  %v68_v20 = vld [vmem:[#allocation2 + $0x37] sm:$0xff]  ;;  %v86_v26 = vld [vmem:[#allocation2 + $0x49] sm:$0xff] }
  0x16   :  { %130 = vrot.lane.b32.xlu0 %v38_v12, %s1779_s30  ;;  %132 = vrot.lane.b32.xlu1 %v39_v13, %s1779_s30  ;;  %v66_v12 = vld [vmem:[#allocation2 + $0x27] sm:$0xff]  ;;  %v69_v23 = vld [vmem:[#allocation2 + $0x3f] sm:$0xff]  ;;  %v87_v29 = vld [vmem:[#allocation2 + $0x51] sm:$0xff] }
  0x17   :  { %v73_v39 = vld [vmem:[#allocation2 + $0x5f] sm:$0xff]  ;;  %v74_v42 = vld [vmem:[#allocation2 + $0x67] sm:$0xff]  ;;  %v91_v45 = vld [vmem:[#allocation2 + $0x71] sm:$0xff] }
  0x18   :  { %1554 = vmatpush1.bf16.msra.mxu0 %v1553_v30  ;;  %v71_v30 = vld [vmem:[#allocation2 + $0x4f] sm:$0xff]  ;;  %v92_v49 = vld [vmem:[#allocation2 + $0x79] sm:$0xff] }
  0x19   :  { %1555 = vmatprep.subr.bf16.mxu0 %v1777_v3  ;;  %v75_v46 = vld [vmem:[#allocation2 + $0x6f] sm:$0xff]  ;;  %v77_v54 = vld [vmem:[#allocation2 + $0x7f] sm:$0xff] }
  0x1a   :  { %134 = vrot.lane.b32.xlu0 %v40_v14, %s1779_s30  ;;  %136 = vrot.lane.b32.xlu1 %v41_v15, %s1779_s30  ;;  %v83_v15 = vld [vmem:[#allocation2 + $0x31] sm:$0xff] }
  0x1c   :  { %1557 = vmatpush1.bf16.msra.mxu0 %v1556_v35  ;;  %v72_v35 = vld [vmem:[#allocation2 + $0x57] sm:$0xff] }
  0x1d   :  { %1558 = vmatprep.subr.bf16.mxu0 %v1777_v3 }
  0x1e   :  { %138 = vrot.lane.b32.xlu0 %v42_v16, %s1779_s30  ;;  %140 = vrot.lane.b32.xlu1 %v43_v17, %s1779_s30  ;;  %v67_v16 = vld [vmem:[#allocation2 + $0x2f] sm:$0xff] }
  0x20   :  { %1560 = vmatpush1.bf16.msra.mxu0 %v1559_v38  ;;  %v89_v38 = vld [vmem:[#allocation2 + $0x61] sm:$0xff] }
  0x21   :  { %1561 = vmatprep.subr.bf16.mxu0 %v1777_v3 }
  0x24   :  { %1563 = vmatpush1.bf16.msra.mxu0 %v1562_v41  ;;  %v90_v41 = vld [vmem:[#allocation2 + $0x69] sm:$0xff] }
  0x25   :  { %1564 = vmatprep.subr.bf16.mxu0 %v1777_v3 }
  0x28   :  { %1566 = vmatpush1.bf16.msra.mxu0 %v1565_v44 }
  0x29   :  { %1567 = vmatprep.subr.bf16.mxu0 %v1777_v3 }
  0x2c   :  { %1569 = vmatpush1.bf16.msra.mxu0 %v1568_v47 }
  0x2d   :  { %1570 = vmatprep.subr.bf16.mxu0 %v1777_v3 }
  0x30   :  { %1572 = vmatpush1.bf16.msra.mxu0 %v1571_v50  ;;  %v76_v50 = vld [vmem:[#allocation2 + $0x77] sm:$0xff] }
  0x31   :  { %1573 = vmatprep.subr.bf16.mxu0 %v1777_v3 }
  0x34   :  { %1575 = vmatpush1.bf16.msra.mxu0 %v1574_v53  ;;  %v93_v53 = vld [vmem:[#allocation2 + $0x81] sm:$0xff] }
  0x35   :  { %1576 = vmatprep.subr.bf16.mxu0 %v1777_v3 }
  0x38   :  { %1578 = vmatpush1.bf16.msra.mxu0 %v1577_v56  ;;  %v551_v56 = vld [vmem:[%s2628_s3] sm:$0xff] }
  0x39   :  { %1651 = vmatprep.subr.bf16.mxu0 %v1777_v3 }
  0x74   :  { %v111_v58 = vpop.permute.xlu0 %110  ;;  %v115_v62 = vpop.permute.xlu1 %114 }
  0x75   :  { %v158_v60 = vsel %vm44_vm0, %v62_v57, %v111_v58  ;;  %v160_v5 = vsel %vm44_vm0, %v64_v1, %v115_v62  ;;  %v552_v57 = vld [vmem:[%s2628_s3 + $0x8] sm:$0xff]  ;;  %v553_v58 = vld [vmem:[%s2628_s3 + $0x10] sm:$0xff]  ;;  %v555_v62 = vld [vmem:[%s2628_s3 + $0x20] sm:$0xff] }
  0x76   :  { %318 = vmatmul.mubr.f32.vlgmr.msra.gmra.mrb[0].mxu0 %v158_v60  ;;  %v554_v60 = vld [vmem:[%s2628_s3 + $0x18] sm:$0xff]  ;;  %v557_v1 = vld [vmem:[%s2628_s3 + $0x30] sm:$0xff] }
  0x77   :  { %1378 = vmatprep.mubr.msk.f32.mxu0 %vm44_vm0, %v79_v59  ;;  %v1580_v59 = vpack.c.bf16 %v552_v57, %v551_v56 }
  0x78   :  { %v113_v63 = vpop.permute.xlu0 %112  ;;  %v117_v6 = vpop.permute.xlu1 %116 }
  0x79   :  { %v159_v2 = vsel %vm44_vm0, %v63_v61, %v113_v63  ;;  %v161_v9 = vsel %vm44_vm0, %v65_v8, %v117_v6  ;;  %1581 = vmatpush1.bf16.msra.mxu1 %v1580_v59  ;;  %v1583_v61 = vpack.c.bf16 %v554_v60, %v553_v58  ;;  %v556_v63 = vld [vmem:[%s2628_s3 + $0x28] sm:$0xff]  ;;  %v559_v6 = vld [vmem:[%s2628_s3 + $0x40] sm:$0xff] }
  0x7a   :  { %323 = vmatmul.mubr.f32.gmra.mrb[2].mxu0 %v159_v2  ;;  %1582 = vmatprep.subr.bf16.mxu1 %v1777_v3  ;;  %v558_v2 = vld [vmem:[%s2628_s3 + $0x38] sm:$0xff] }
  0x7b   :  { %1379 = vmatprep.mubr.msk.f32.mxu0 %vm44_vm0, %v80_v0  ;;  %v1586_v0 = vpack.c.bf16 %v556_v63, %v555_v62 }
  0x7c   :  { %v119_v10 = vpop.permute.xlu0 %118  ;;  %v121_v14 = vpop.permute.xlu1 %120 }
  0x7d   :  { %v162_v13 = vsel %vm44_vm0, %v66_v12, %v119_v10  ;;  %v163_v17 = vsel %vm44_vm0, %v67_v16, %v121_v14  ;;  %1584 = vmatpush1.bf16.msra.mxu1 %v1583_v61  ;;  %v562_v10 = vld [vmem:[%s2628_s3 + $0x58] sm:$0xff]  ;;  %v563_v12 = vld [vmem:[%s2628_s3 + $0x60] sm:$0xff] }
  0x7e   :  { %328 = vmatmul.mubr.f32.gmra.mrb[4].mxu0 %v160_v5  ;;  %1585 = vmatprep.subr.bf16.mxu1 %v1777_v3  ;;  %v1589_v5 = vpack.c.bf16 %v558_v2, %v557_v1  ;;  %v566_v16 = vld [vmem:[%s2628_s3 + $0x78] sm:$0xff] }
  0x7f   :  { %1380 = vmatprep.mubr.msk.f32.mxu0 %vm44_vm0, %v81_v7  ;;  %v560_v7 = vld [vmem:[%s2628_s3 + $0x48] sm:$0xff] }
  0x80   :  { %v123_v18 = vpop.permute.xlu0 %122  ;;  %v125_v22 = vpop.permute.xlu1 %124  ;;  %v1592_v8 = vpack.c.bf16 %v560_v7, %v559_v6 }
  0x81   :  { %v164_v21 = vsel %vm44_vm0, %v68_v20, %v123_v18  ;;  %v165_v24 = vsel %vm44_vm0, %v69_v23, %v125_v22  ;;  %1587 = vmatpush1.bf16.msra.mxu1 %v1586_v0  ;;  %v567_v18 = vld [vmem:[%s2628_s3 + $0x80] sm:$0xff]  ;;  %v570_v22 = vld [vmem:[%s2628_s3 + $0x98] sm:$0xff] }
  0x82   :  { %333 = vmatmul.mubr.f32.gmra.mrb[6].mxu0 %v161_v9  ;;  %1588 = vmatprep.subr.bf16.mxu1 %v1777_v3  ;;  %v561_v9 = vld [vmem:[%s2628_s3 + $0x50] sm:$0xff] }
  0x83   :  { %1381 = vmatprep.mubr.msk.f32.mxu0 %vm44_vm0, %v82_v11  ;;  %v1595_v11 = vpack.c.bf16 %v562_v10, %v561_v9 }
  0x84   :  { %v127_v25 = vpop.permute.xlu0 %126  ;;  %v129_v28 = vpop.permute.xlu1 %128 }
  0x85   :  { %v166_v27 = vsel %vm44_vm0, %v1937_v34, %v127_v25  ;;  %v167_v31 = vsel %vm44_vm0, %v71_v30, %v129_v28  ;;  %1590 = vmatpush1.bf16.msra.mxu1 %v1589_v5  ;;  %v572_v25 = vld [vmem:[%s2628_s3 + $0xa8] sm:$0xff]  ;;  %v574_v28 = vld [vmem:[%s2628_s3 + $0xb8] sm:$0xff]  ;;  %v2117_v30 = vld [vmem:[%s2629_s2] ss:$0 sm:$0xff] }
  0x86   :  { %338 = vmatmul.mubr.f32.gmra.mrb[8].mxu0 %v162_v13  ;;  %1591 = vmatprep.subr.bf16.mxu1 %v1777_v3  ;;  %v564_v13 = vld [vmem:[%s2628_s3 + $0x68] sm:$0xff] }
  0x87   :  { %1382 = vmatprep.mubr.msk.f32.mxu0 %vm44_vm0, %v83_v15  ;;  %v1598_v14 = vpack.c.bf16 %v564_v13, %v563_v12  ;;  %v565_v15 = vld [vmem:[%s2628_s3 + $0x70] sm:$0xff] }
  0x88   :  { %v131_v32 = vpop.permute.xlu0 %130  ;;  %v133_v37 = vpop.permute.xlu1 %132 }
  0x89   :  { %v168_v36 = vsel %vm44_vm0, %v72_v35, %v131_v32  ;;  %v169_v34 = vsel %vm44_vm0, %v73_v39, %v133_v37  ;;  %1593 = vmatpush1.bf16.msra.mxu1 %v1592_v8 }
  0x8a   :  { %343 = vmatmul.mubr.f32.gmra.mrb[10].mxu0 %v163_v17  ;;  %1594 = vmatprep.subr.bf16.mxu1 %v1777_v3  ;;  %v1601_v17 = vpack.c.bf16 %v566_v16, %v565_v15 }
  0x8b   :  { %1383 = vmatprep.mubr.msk.f32.mxu0 %vm44_vm0, %v84_v19  ;;  %v568_v19 = vld [vmem:[%s2628_s3 + $0x88] sm:$0xff] }
  0x8c   :  { %v135_v40 = vpop.permute.xlu0 %134  ;;  %v137_v44 = vpop.permute.xlu1 %136  ;;  %v1604_v20 = vpack.c.bf16 %v568_v19, %v567_v18 }
  0x8d   :  { %v170_v43 = vsel %vm44_vm0, %v74_v42, %v135_v40  ;;  %v171_v47 = vsel %vm44_vm0, %v75_v46, %v137_v44  ;;  %1596 = vmatpush1.bf16.msra.mxu1 %v1595_v11 }
  0x8e   :  { %348 = vmatmul.mubr.f32.gmra.mrb[12].mxu0 %v164_v21  ;;  %1597 = vmatprep.subr.bf16.mxu1 %v1777_v3  ;;  %v569_v21 = vld [vmem:[%s2628_s3 + $0x90] sm:$0xff] }
  0x8f   :  { %1384 = vmatprep.mubr.msk.f32.mxu0 %vm44_vm0, %v1935_v33  ;;  %v88_v33 = vld [vmem:[#allocation2 + $0x59] sm:$0xff]  ;;  %v1607_v23 = vpack.c.bf16 %v570_v22, %v569_v21 }
  0x90   :  { %v139_v48 = vpop.permute.xlu0 %138  ;;  %v141_v52 = vpop.permute.xlu1 %140 }
  0x91   :  { %v172_v51 = vsel %vm44_vm0, %v76_v50, %v139_v48  ;;  %v173_v55 = vsel %vm44_vm0, %v77_v54, %v141_v52  ;;  %1599 = vmatpush1.bf16.msra.mxu1 %v1598_v14 }
  0x92   :  { %353 = vmatmul.mubr.f32.gmra.mrb[14].mxu0 %v165_v24  ;;  %1600 = vmatprep.subr.bf16.mxu1 %v1777_v3  ;;  %v571_v24 = vld [vmem:[%s2628_s3 + $0xa0] sm:$0xff] }
  0x93   :  { %1385 = vmatprep.mubr.msk.f32.mxu0 %vm44_vm0, %v86_v26  ;;  %v1610_v26 = vpack.c.bf16 %v572_v25, %v571_v24 }
  0x95   :  { %1602 = vmatpush1.bf16.msra.mxu1 %v1601_v17 }
  0x96   :  { %358 = vmatmul.mubr.f32.gmra.mrb[16].mxu0 %v166_v27  ;;  %1603 = vmatprep.subr.bf16.mxu1 %v1777_v3  ;;  %v573_v27 = vld [vmem:[%s2628_s3 + $0xb0] sm:$0xff] }
  0x97   :  { %1386 = vmatprep.mubr.msk.f32.mxu0 %vm44_vm0, %v87_v29  ;;  %v1613_v29 = vpack.c.bf16 %v574_v28, %v573_v27 }
  0x99   :  { %1605 = vmatpush1.bf16.msra.mxu1 %v1604_v20 }
  0x9a   :  { %363 = vmatmul.mubr.f32.gmra.mrb[18].mxu0 %v167_v31  ;;  %1606 = vmatprep.subr.bf16.mxu1 %v1777_v3 }
  0x9b   :  { %1387 = vmatprep.mubr.msk.f32.mxu0 %vm44_vm0, %v88_v33 }
  0x9d   :  { %1608 = vmatpush1.bf16.msra.mxu1 %v1607_v23 }
  0x9e   :  { %368 = vmatmul.mubr.f32.gmra.mrb[20].mxu0 %v168_v36  ;;  %1609 = vmatprep.subr.bf16.mxu1 %v1777_v3 }
  0x9f   :  { %1388 = vmatprep.mubr.msk.f32.mxu0 %vm44_vm0, %v89_v38 }
  0xa1   :  { %1611 = vmatpush1.bf16.msra.mxu1 %v1610_v26 }
  0xa2   :  { %373 = vmatmul.mubr.f32.gmra.mrb[22].mxu0 %v169_v34  ;;  %1612 = vmatprep.subr.bf16.mxu1 %v1777_v3 }
  0xa3   :  { %1389 = vmatprep.mubr.msk.f32.mxu0 %vm44_vm0, %v90_v41 }
  0xa5   :  { %1614 = vmatpush1.bf16.msra.mxu1 %v1613_v29 }
  0xa6   :  { %378 = vmatmul.mubr.f32.gmra.mrb[24].mxu0 %v170_v43  ;;  %1615 = vmatprep.subr.bf16.mxu1 %v1777_v3 }
  0xa7   :  { %1390 = vmatprep.mubr.msk.f32.mxu0 %vm44_vm0, %v91_v45 }
  0xaa   :  { %383 = vmatmul.mubr.f32.gmra.mrb[26].mxu0 %v171_v47 }
  0xab   :  { %1391 = vmatprep.mubr.msk.f32.mxu0 %vm44_vm0, %v92_v49 }
  0xae   :  { %388 = vmatmul.mubr.f32.gmra.mrb[28].mxu0 %v172_v51 }
  0xaf   :  { %1392 = vmatprep.mubr.msk.f32.mxu0 %vm44_vm0, %v93_v53 }
  0xb2   :  { %393 = vmatmul.mubr.f32.gmra.mrb[30].mxu0 %v173_v55 }
 0x149   :  { %v319_v31 = vpop.f32.mrb[0].mxu0 }
 0x14a   :  { %v320_v32 = vadd.f32 %v2117_v30, %v319_v31  ;;  %v321_v33 = vpop.f32.mrb[1].mxu0 }
 0x14c   :  { %398 = vst.msk [vmem:[#allocation3] sm:$0xff] %vm44_vm0, %v320_v32 }
 0x14d   :  { %v324_v35 = vpop.f32.mrb[2].mxu0 }
 0x14e   :  { %v325_v36 = vadd.f32 %v2117_v30, %v324_v35  ;;  %v326_v37 = vpop.f32.mrb[3].mxu0 }
 0x150   :  { %399 = vst.msk [vmem:[#allocation3 + $0x8] sm:$0xff] %vm44_vm0, %v325_v36 }
 0x151   :  { %v329_v38 = vpop.f32.mrb[4].mxu0 }
 0x152   :  { %v330_v39 = vadd.f32 %v2117_v30, %v329_v38  ;;  %v331_v34 = vpop.f32.mrb[5].mxu0 }
 0x154   :  { %400 = vst.msk [vmem:[#allocation3 + $0x10] sm:$0xff] %vm44_vm0, %v330_v39 }
 0x155   :  { %v334_v40 = vpop.f32.mrb[6].mxu0 }
 0x156   :  { %v335_v41 = vadd.f32 %v2117_v30, %v334_v40  ;;  %v336_v42 = vpop.f32.mrb[7].mxu0 }
 0x157   :  { %v414_v43 = vld [vmem:[#allocation3] ss:$2 sm:$0xff]  ;;  %v430_v44 = vld [vmem:[#allocation3 + $0x1] ss:$2 sm:$0xff] }
 0x158   :  { %401 = vst.msk [vmem:[#allocation3 + $0x18] sm:$0xff] %vm44_vm0, %v335_v41  ;;  %v445_v48 = vmax.f32 %v414_v43, %v430_v44 }
 0x159   :  { %v339_v45 = vpop.f32.mrb[8].mxu0 }
 0x15a   :  { %v340_v46 = vadd.f32 %v2117_v30, %v339_v45  ;;  %v341_v47 = vpop.f32.mrb[9].mxu0 }
 0x15b   :  { %v454_v49 = vld [vmem:[#allocation3 + $0x2] ss:$2 sm:$0xff] }
 0x15c   :  { %402 = vst.msk [vmem:[#allocation3 + $0x20] sm:$0xff] %vm44_vm0, %v340_v46  ;;  %v469_v50 = vmax.f32 %v445_v48, %v454_v49 }
 0x15d   :  { %v344_v51 = vpop.f32.mrb[10].mxu0 }
 0x15e   :  { %v345_v52 = vadd.f32 %v2117_v30, %v344_v51  ;;  %v346_v53 = vpop.f32.mrb[11].mxu0  ;;  %v477_v54 = vmax.f32 %v469_v50, 0.0 }
 0x15f   :  { %v416_v55 = vld [vmem:[#allocation3 + $0x10] ss:$2 sm:$0xff]  ;;  %v432_v56 = vld [vmem:[#allocation3 + $0x11] ss:$2 sm:$0xff] }
 0x160   :  { %403 = vst.msk [vmem:[#allocation3 + $0x28] sm:$0xff] %vm44_vm0, %v345_v52  ;;  %519 = vrot.lane.b32.xlu0 %v477_v54, %s1779_s30  ;;  %485 = vst.msk [vmem:[#allocation2 + $0x8] sm:$0xff] %vm44_vm0, %v477_v54  ;;  %v446_v60 = vmax.f32 %v416_v55, %v432_v56 }
 0x161   :  { %v349_v57 = vpop.f32.mrb[12].mxu0 }
 0x162   :  { %v350_v58 = vadd.f32 %v2117_v30, %v349_v57  ;;  %v351_v59 = vpop.f32.mrb[13].mxu0 }
 0x163   :  { %v456_v61 = vld [vmem:[#allocation3 + $0x12] ss:$2 sm:$0xff] }
 0x164   :  { %404 = vst.msk [vmem:[#allocation3 + $0x30] sm:$0xff] %vm44_vm0, %v350_v58  ;;  %v470_v62 = vmax.f32 %v446_v60, %v456_v61 }
 0x165   :  { %v354_v63 = vpop.f32.mrb[14].mxu0 }
 0x166   :  { %v355_v0 = vadd.f32 %v2117_v30, %v354_v63  ;;  %v356_v1 = vpop.f32.mrb[15].mxu0  ;;  %v478_v2 = vmax.f32 %v470_v62, 0.0 }
 0x167   :  { %v418_v5 = vld [vmem:[#allocation3 + $0x20] ss:$2 sm:$0xff]  ;;  %v434_v6 = vld [vmem:[#allocation3 + $0x21] ss:$2 sm:$0xff] }
 0x168   :  { %405 = vst.msk [vmem:[#allocation3 + $0x38] sm:$0xff] %vm44_vm0, %v355_v0  ;;  %521 = vrot.lane.b32.xlu1 %v478_v2, %s1779_s30  ;;  %486 = vst.msk [vmem:[#allocation2 + $0x10] sm:$0xff] %vm44_vm0, %v478_v2  ;;  %v447_v10 = vmax.f32 %v418_v5, %v434_v6 }
 0x169   :  { %v359_v7 = vpop.f32.mrb[16].mxu0 }
 0x16a   :  { %v360_v8 = vadd.f32 %v2117_v30, %v359_v7  ;;  %v361_v9 = vpop.f32.mrb[17].mxu0  ;;  %v495_v7 = vld [vmem:[#allocation2 + $0x7] sm:$0xff] }
 0x16b   :  { %v458_v11 = vld [vmem:[#allocation3 + $0x22] ss:$2 sm:$0xff] }
 0x16c   :  { %406 = vst.msk [vmem:[#allocation3 + $0x40] sm:$0xff] %vm44_vm0, %v360_v8  ;;  %v471_v12 = vmax.f32 %v447_v10, %v458_v11 }
 0x16d   :  { %v364_v13 = vpop.f32.mrb[18].mxu0 }
 0x16e   :  { %v365_v14 = vadd.f32 %v2117_v30, %v364_v13  ;;  %v366_v15 = vpop.f32.mrb[19].mxu0  ;;  %v479_v16 = vmax.f32 %v471_v12, 0.0 }
 0x16f   :  { %v503_v17 = vld [vmem:[#allocation2 + $0x9] sm:$0xff] }
 0x170   :  { %v420_v18 = vld [vmem:[#allocation3 + $0x30] ss:$2 sm:$0xff]  ;;  %v436_v19 = vld [vmem:[#allocation3 + $0x31] ss:$2 sm:$0xff]  ;;  %407 = vst.msk [vmem:[#allocation3 + $0x48] sm:$0xff] %vm44_vm0, %v365_v14  ;;  %487 = vst.msk [vmem:[#allocation2 + $0x18] sm:$0xff] %vm44_vm0, %v479_v16  ;;  %523 = vrot.lane.b32.xlu0 %v479_v16, %s1779_s30  ;;  %1394 = vmatprep.mubr.msk.f32.mxu1 %vm44_vm0, %v503_v17 }
 0x171   :  { %v369_v20 = vpop.f32.mrb[20].mxu0  ;;  %v448_v23 = vmax.f32 %v420_v18, %v436_v19  ;;  %v496_v11 = vld [vmem:[#allocation2 + $0xf] sm:$0xff] }
 0x172   :  { %v370_v21 = vadd.f32 %v2117_v30, %v369_v20  ;;  %v371_v22 = vpop.f32.mrb[21].mxu0 }
 0x173   :  { %v460_v24 = vld [vmem:[#allocation3 + $0x32] ss:$2 sm:$0xff] }
 0x174   :  { %408 = vst.msk [vmem:[#allocation3 + $0x50] sm:$0xff] %vm44_vm0, %v370_v21  ;;  %v472_v25 = vmax.f32 %v448_v23, %v460_v24 }
 0x175   :  { %v374_v26 = vpop.f32.mrb[22].mxu0 }
 0x176   :  { %v375_v27 = vadd.f32 %v2117_v30, %v374_v26  ;;  %v376_v28 = vpop.f32.mrb[23].mxu0  ;;  %v480_v29 = vmax.f32 %v472_v25, 0.0 }
 0x177   :  { %v422_v31 = vld [vmem:[#allocation3 + $0x40] ss:$2 sm:$0xff]  ;;  %v438_v32 = vld [vmem:[#allocation3 + $0x41] ss:$2 sm:$0xff] }
 0x178   :  { %409 = vst.msk [vmem:[#allocation3 + $0x58] sm:$0xff] %vm44_vm0, %v375_v27  ;;  %488 = vst.msk [vmem:[#allocation2 + $0x20] sm:$0xff] %vm44_vm0, %v480_v29  ;;  %525 = vrot.lane.b32.xlu1 %v480_v29, %s1779_s30  ;;  %v449_v37 = vmax.f32 %v422_v31, %v438_v32  ;;  %v504_v9 = vld [vmem:[#allocation2 + $0x11] sm:$0xff] }
 0x179   :  { %v379_v33 = vpop.f32.mrb[24].mxu0  ;;  %v497_v15 = vld [vmem:[#allocation2 + $0x17] sm:$0xff] }
 0x17a   :  { %v380_v35 = vadd.f32 %v2117_v30, %v379_v33  ;;  %v381_v36 = vpop.f32.mrb[25].mxu0 }
 0x17b   :  { %v462_v38 = vld [vmem:[#allocation3 + $0x42] ss:$2 sm:$0xff] }
 0x17c   :  { %410 = vst.msk [vmem:[#allocation3 + $0x60] sm:$0xff] %vm44_vm0, %v380_v35  ;;  %v473_v39 = vmax.f32 %v449_v37, %v462_v38  ;;  %v1402_v37 = vld [vmem:[%s2628_s3 + $0xc0] sm:$0xff]  ;;  %v1403_v38 = vld [vmem:[%s2628_s3 + $0xc8] sm:$0xff] }
 0x17d   :  { %v384_v34 = vpop.f32.mrb[26].mxu0 }
 0x17e   :  { %v385_v40 = vadd.f32 %v2117_v30, %v384_v34  ;;  %v386_v41 = vpop.f32.mrb[27].mxu0  ;;  %v481_v42 = vmax.f32 %v473_v39, 0.0  ;;  %v1404_v39 = vld [vmem:[%s2628_s3 + $0xd0] sm:$0xff]  ;;  %v1616_v34 = vpack.c.bf16 %v1403_v38, %v1402_v37 }
 0x17f   :  { %v424_v43 = vld [vmem:[#allocation3 + $0x50] ss:$2 sm:$0xff]  ;;  %v440_v44 = vld [vmem:[#allocation3 + $0x51] ss:$2 sm:$0xff] }
 0x180   :  { %411 = vst.msk [vmem:[#allocation3 + $0x68] sm:$0xff] %vm44_vm0, %v385_v40  ;;  %489 = vst.msk [vmem:[#allocation2 + $0x28] sm:$0xff] %vm44_vm0, %v481_v42  ;;  %527 = vrot.lane.b32.xlu0 %v481_v42, %s1779_s30  ;;  %v450_v48 = vmax.f32 %v424_v43, %v440_v44  ;;  %v505_v13 = vld [vmem:[#allocation2 + $0x19] sm:$0xff]  ;;  %v1407_v43 = vld [vmem:[%s2628_s3 + $0xe8] sm:$0xff] }
 0x181   :  { %v389_v45 = vpop.f32.mrb[28].mxu0  ;;  %v498_v18 = vld [vmem:[#allocation2 + $0x1f] sm:$0xff] }
 0x182   :  { %v390_v46 = vadd.f32 %v2117_v30, %v389_v45  ;;  %v391_v47 = vpop.f32.mrb[29].mxu0  ;;  %v1405_v40 = vld [vmem:[%s2628_s3 + $0xd8] sm:$0xff]  ;;  %v1406_v42 = vld [vmem:[%s2628_s3 + $0xe0] sm:$0xff]  ;;  %v1408_v45 = vld [vmem:[%s2628_s3 + $0xf0] sm:$0xff] }
 0x183   :  { %v464_v49 = vld [vmem:[#allocation3 + $0x52] ss:$2 sm:$0xff]  ;;  %v1619_v41 = vpack.c.bf16 %v1405_v40, %v1404_v39  ;;  %v1622_v44 = vpack.c.bf16 %v1407_v43, %v1406_v42 }
 0x184   :  { %412 = vst.msk [vmem:[#allocation3 + $0x70] sm:$0xff] %vm44_vm0, %v390_v46  ;;  %v474_v50 = vmax.f32 %v450_v48, %v464_v49  ;;  %v1409_v46 = vld [vmem:[%s2628_s3 + $0xf8] sm:$0xff]  ;;  %v1410_v48 = vld [vmem:[%s2628_s3 + $0x100] sm:$0xff]  ;;  %v1411_v49 = vld [vmem:[%s2628_s3 + $0x108] sm:$0xff] }
 0x185   :  { %v394_v51 = vpop.f32.mrb[30].mxu0  ;;  %v1625_v47 = vpack.c.bf16 %v1409_v46, %v1408_v45 }
 0x186   :  { %v395_v52 = vadd.f32 %v2117_v30, %v394_v51  ;;  %v396_v53 = vpop.f32.mrb[31].mxu0  ;;  %v482_v54 = vmax.f32 %v474_v50, 0.0  ;;  %v1628_v50 = vpack.c.bf16 %v1411_v49, %v1410_v48  ;;  %v1412_v51 = vld [vmem:[%s2628_s3 + $0x110] sm:$0xff] }
 0x187   :  { %v426_v55 = vld [vmem:[#allocation3 + $0x60] ss:$2 sm:$0xff]  ;;  %v442_v56 = vld [vmem:[#allocation3 + $0x61] ss:$2 sm:$0xff]  ;;  %v506_v57 = vld [vmem:[#allocation2 + $0x21] sm:$0xff] }
 0x188   :  { %413 = vst.msk [vmem:[#allocation3 + $0x78] sm:$0xff] %vm44_vm0, %v395_v52  ;;  %490 = vst.msk [vmem:[#allocation2 + $0x30] sm:$0xff] %vm44_vm0, %v482_v54  ;;  %529 = vrot.lane.b32.xlu1 %v482_v54, %s1779_s30  ;;  %v499_v58 = vld [vmem:[#allocation2 + $0x27] sm:$0xff]  ;;  %v451_v59 = vmax.f32 %v426_v55, %v442_v56  ;;  %v1413_v52 = vld [vmem:[%s2628_s3 + $0x118] sm:$0xff] }
 0x189   :  { %739 = vst.msk [vmem:[#allocation2 + $0x27] sm:$0x1] %vm26_vm1, %v1778_v4  ;;  %v1631_v53 = vpack.c.bf16 %v1413_v52, %v1412_v51  ;;  %v1414_v54 = vld [vmem:[%s2628_s3 + $0x120] sm:$0xff]  ;;  %v1415_v55 = vld [vmem:[%s2628_s3 + $0x128] sm:$0xff] }
 0x18a   :  { %v1634_v56 = vpack.c.bf16 %v1415_v55, %v1414_v54 }
 0x18b   :  { %v466_v60 = vld [vmem:[#allocation3 + $0x62] ss:$2 sm:$0xff] }
 0x18c   :  { %v475_v61 = vmax.f32 %v451_v59, %v466_v60  ;;  %v1418_v60 = vld [vmem:[%s2628_s3 + $0x140] sm:$0xff] }
 0x18e   :  { %v483_v62 = vmax.f32 %v475_v61, 0.0  ;;  %v1419_v61 = vld [vmem:[%s2628_s3 + $0x148] sm:$0xff] }
 0x18f   :  { %v428_v30 = vld [vmem:[#allocation3 + $0x70] ss:$2 sm:$0x7f]  ;;  %v444_v63 = vld [vmem:[#allocation3 + $0x71] ss:$2 sm:$0x7f] }
 0x190   :  { %491 = vst.msk [vmem:[#allocation2 + $0x38] sm:$0xff] %vm44_vm0, %v483_v62  ;;  %531 = vrot.lane.b32.xlu0 %v483_v62, %s1779_s30  ;;  %v452_v0 = vmax.f32 %v428_v30, %v444_v63  ;;  %v468_v1 = vld [vmem:[#allocation3 + $0x72] ss:$2 sm:$0x7f]  ;;  %v500_v25 = vld [vmem:[#allocation2 + $0x2f] sm:$0xff]  ;;  %v1640_v62 = vpack.c.bf16 %v1419_v61, %v1418_v60  ;;  %v1421_v63 = vld [vmem:[%s2628_s3 + $0x158] sm:$0xff] }
 0x191   :  { %v507_v20 = vld [vmem:[#allocation2 + $0x29] sm:$0xff] }
 0x192   :  { %v476_v2 = vmax.f32 %v452_v0, %v468_v1  ;;  %v1420_v30 = vld [vmem:[%s2628_s3 + $0x150] sm:$0xff]  ;;  %v1422_v1 = vld [vmem:[%s2628_s3 + $0x160] sm:$0xff] }
 0x193   :  { %v1643_v0 = vpack.c.bf16 %v1421_v63, %v1420_v30 }
 0x194   :  { %v484_v5 = vmax.f32 %v476_v2, 0.0  ;;  %v1423_v2 = vld [vmem:[%s2628_s3 + $0x168] sm:$0xff] }
 0x196   :  { %493 = vst.msk [vmem:[#allocation2 + $0x40] sm:$0x7f] %vm492_vm2, %v484_v5  ;;  %533 = vrot.lane.b32.xlu1 %v484_v5, %s1779_s30  ;;  %v1646_v5 = vpack.c.bf16 %v1423_v2, %v1422_v1  ;;  %v1432_v2 = vld [vmem:[%s2628_s3 + $0x180] sm:$0xff] }
 0x197   :  { %v508_v23 = vld [vmem:[#allocation2 + $0x31] sm:$0xff] }
 0x198   :  { %v501_v29 = vld [vmem:[#allocation2 + $0x37] sm:$0xff] }
 0x19d   :  { %v509_v27 = vld [vmem:[#allocation2 + $0x39] sm:$0xff]  ;;  %v510_v32 = vld [vmem:[#allocation2 + $0x41] sm:$0x7f] }
 0x19e   :  { %v502_v35 = vld [vmem:[#allocation2 + $0x3f] sm:$0x7f] }
 0x1d2   :  { %v520_v6 = vpop.permute.xlu0 %519 }
 0x1d3   :  { %v543_v8 = vsel %vm44_vm0, %v495_v7, %v520_v6  ;;  %v1424_v6 = vld [vmem:[%s2628_s3 + $0x170] sm:$0xff]  ;;  %v1425_v7 = vld [vmem:[%s2628_s3 + $0x178] sm:$0xff] }
 0x1d4   :  { %671 = vmatmul.mubr.f32.vlgmr.msra.gmra.mrb[0].mxu1 %v543_v8  ;;  %v1649_v8 = vpack.c.bf16 %v1425_v7, %v1424_v6  ;;  %v1434_v6 = vld [vmem:[%s2628_s3 + $0x190] sm:$0xff] }
 0x1d5   :  { %1395 = vmatprep.mubr.msk.f32.mxu1 %vm44_vm0, %v504_v9  ;;  %1617 = vmatpush1.bf16.msra.mxu1 %v1616_v34  ;;  %v1393_v9 = vld [vmem:[%s2630_s4] ss:$0 sm:$0xff] }
 0x1d6   :  { %1618 = vmatprep.subr.bf16.mxu1 %v1777_v3 }
 0x1d9   :  { %1620 = vmatpush1.bf16.msra.mxu1 %v1619_v41 }
 0x1da   :  { %v522_v10 = vpop.permute.xlu1 %521  ;;  %1621 = vmatprep.subr.bf16.mxu1 %v1777_v3 }
 0x1db   :  { %v544_v12 = vsel %vm44_vm0, %v496_v11, %v522_v10 }
 0x1dc   :  { %676 = vmatmul.mubr.f32.gmra.mrb[2].mxu1 %v544_v12 }
 0x1dd   :  { %1396 = vmatprep.mubr.msk.f32.mxu1 %vm44_vm0, %v505_v13  ;;  %1623 = vmatpush1.bf16.msra.mxu1 %v1622_v44 }
 0x1de   :  { %1624 = vmatprep.subr.bf16.mxu1 %v1777_v3 }
 0x1e1   :  { %1626 = vmatpush1.bf16.msra.mxu1 %v1625_v47 }
 0x1e2   :  { %v524_v14 = vpop.permute.xlu0 %523  ;;  %1627 = vmatprep.subr.bf16.mxu1 %v1777_v3 }
 0x1e3   :  { %v545_v16 = vsel %vm44_vm0, %v497_v15, %v524_v14 }
 0x1e4   :  { %681 = vmatmul.mubr.f32.gmra.mrb[4].mxu1 %v545_v16 }
 0x1e5   :  { %1397 = vmatprep.mubr.msk.f32.mxu1 %vm44_vm0, %v506_v57  ;;  %1629 = vmatpush1.bf16.msra.mxu1 %v1628_v50  ;;  %v1416_v57 = vld [vmem:[%s2628_s3 + $0x130] sm:$0xff] }
 0x1e6   :  { %1630 = vmatprep.subr.bf16.mxu1 %v1777_v3 }
 0x1e9   :  { %1632 = vmatpush1.bf16.msra.mxu1 %v1631_v53 }
 0x1ea   :  { %v526_v17 = vpop.permute.xlu1 %525  ;;  %1633 = vmatprep.subr.bf16.mxu1 %v1777_v3 }
 0x1eb   :  { %v546_v19 = vsel %vm44_vm0, %v498_v18, %v526_v17 }
 0x1ec   :  { %686 = vmatmul.mubr.f32.gmra.mrb[6].mxu1 %v546_v19 }
 0x1ed   :  { %1398 = vmatprep.mubr.msk.f32.mxu1 %vm44_vm0, %v507_v20  ;;  %1635 = vmatpush1.bf16.msra.mxu1 %v1634_v56 }
 0x1ee   :  { %1636 = vmatprep.subr.bf16.mxu1 %v1777_v3 }
 0x1f2   :  { %v528_v21 = vpop.permute.xlu0 %527 }
 0x1f3   :  { %v547_v22 = vsel %vm44_vm0, %v499_v58, %v528_v21  ;;  %v1417_v58 = vld [vmem:[%s2628_s3 + $0x138] sm:$0xff] }
 0x1f4   :  { %691 = vmatmul.mubr.f32.gmra.mrb[8].mxu1 %v547_v22  ;;  %v1637_v59 = vpack.c.bf16 %v1417_v58, %v1416_v57 }
 0x1f5   :  { %1399 = vmatprep.mubr.msk.f32.mxu1 %vm44_vm0, %v508_v23 }
 0x1f6   :  { %1638 = vmatpush1.bf16.msra.mxu1 %v1637_v59 }
 0x1f7   :  { %1639 = vmatprep.subr.bf16.mxu1 %v1777_v3 }
 0x1fa   :  { %v530_v24 = vpop.permute.xlu1 %529  ;;  %1641 = vmatpush1.bf16.msra.mxu1 %v1640_v62 }
 0x1fb   :  { %v548_v26 = vsel %vm44_vm0, %v500_v25, %v530_v24  ;;  %1642 = vmatprep.subr.bf16.mxu1 %v1777_v3 }
 0x1fc   :  { %696 = vmatmul.mubr.f32.gmra.mrb[10].mxu1 %v548_v26 }
 0x1fd   :  { %1400 = vmatprep.mubr.msk.f32.mxu1 %vm44_vm0, %v509_v27 }
 0x1fe   :  { %1644 = vmatpush1.bf16.msra.mxu1 %v1643_v0 }
 0x1ff   :  { %1645 = vmatprep.subr.bf16.mxu1 %v1777_v3 }
 0x202   :  { %v532_v28 = vpop.permute.xlu0 %531  ;;  %1647 = vmatpush1.bf16.msra.mxu1 %v1646_v5  ;;  %v1433_v5 = vld [vmem:[%s2628_s3 + $0x188] sm:$0xff] }
 0x203   :  { %v549_v31 = vsel %vm44_vm0, %v501_v29, %v532_v28  ;;  %1648 = vmatprep.subr.bf16.mxu1 %v1777_v3  ;;  %v1652_v7 = vpack.c.bf16 %v1433_v5, %v1432_v2 }
 0x204   :  { %701 = vmatmul.mubr.f32.gmra.mrb[12].mxu1 %v549_v31 }
 0x205   :  { %1401 = vmatprep.mubr.msk.f32.mxu1 %vm44_vm0, %v510_v32  ;;  %1653 = vmatpush1.bf16.msra.mxu0 %v1652_v7  ;;  %v1460_v7 = vld [vmem:[%s2628_s3 + $0x240] sm:$0xff] }
 0x206   :  { %1650 = vmatpush1.bf16.msra.mxu1 %v1649_v8  ;;  %v1435_v8 = vld [vmem:[%s2628_s3 + $0x198] sm:$0xff]  ;;  %1654 = vmatprep.subr.bf16.mxu0 %v1777_v3 }
 0x207   :  { %1687 = vmatprep.subr.bf16.mxu1 %v1777_v3 }
 0x208   :  { %v534_v33 = vpop.permute.xlu1 %533 }
 0x209   :  { %v550_v36 = vsel %vm44_vm0, %v502_v35, %v534_v33 }
 0x20a   :  { %706 = vmatmul.mubr.f32.gmra.mrb[14].mxu1 %v550_v36 }
 0x2a7   :  { %v672_v10 = vpop.f32.mrb[0].mxu1 }
 0x2a8   :  { %v673_v11 = vadd.f32 %v1393_v9, %v672_v10  ;;  %v674_v12 = vpop.f32.mrb[1].mxu1  ;;  %v1436_v10 = vld [vmem:[%s2628_s3 + $0x1a0] sm:$0xff] }
 0x2aa   :  { %711 = vst.msk [vmem:[#allocation3] sm:$0xff] %vm44_vm0, %v673_v11  ;;  %v1437_v11 = vld [vmem:[%s2628_s3 + $0x1a8] sm:$0xff] }
 0x2ab   :  { %v1658_v12 = vpack.c.bf16 %v1437_v11, %v1436_v10  ;;  %v1463_v11 = vld [vmem:[%s2628_s3 + $0x258] sm:$0xff] }
 0x2af   :  { %v677_v13 = vpop.f32.mrb[2].mxu1 }
 0x2b0   :  { %v678_v14 = vadd.f32 %v1393_v9, %v677_v13  ;;  %v679_v15 = vpop.f32.mrb[3].mxu1  ;;  %v1438_v13 = vld [vmem:[%s2628_s3 + $0x1b0] sm:$0xff] }
 0x2b2   :  { %712 = vst.msk [vmem:[#allocation3 + $0x8] sm:$0xff] %vm44_vm0, %v678_v14  ;;  %v1439_v14 = vld [vmem:[%s2628_s3 + $0x1b8] sm:$0xff] }
 0x2b3   :  { %v1661_v15 = vpack.c.bf16 %v1439_v14, %v1438_v13  ;;  %v1464_v13 = vld [vmem:[%s2628_s3 + $0x260] sm:$0xff]  ;;  %v1465_v14 = vld [vmem:[%s2628_s3 + $0x268] sm:$0xff] }
 0x2b7   :  { %v682_v16 = vpop.f32.mrb[4].mxu1 }
 0x2b8   :  { %v683_v17 = vadd.f32 %v1393_v9, %v682_v16  ;;  %v684_v18 = vpop.f32.mrb[5].mxu1  ;;  %v1440_v16 = vld [vmem:[%s2628_s3 + $0x1c0] sm:$0xff] }
 0x2b9   :  { %v719_v19 = vld [vmem:[#allocation3] ss:$2 sm:$0xff]  ;;  %v723_v20 = vld [vmem:[#allocation3 + $0x1] ss:$2 sm:$0xff] }
 0x2ba   :  { %713 = vst.msk [vmem:[#allocation3 + $0x10] sm:$0xff] %vm44_vm0, %v683_v17  ;;  %v727_v21 = vmax.f32 %v719_v19, %v723_v20  ;;  %v1441_v17 = vld [vmem:[%s2628_s3 + $0x1c8] sm:$0xff]  ;;  %v1442_v19 = vld [vmem:[%s2628_s3 + $0x1d0] sm:$0xff]  ;;  %v1443_v20 = vld [vmem:[%s2628_s3 + $0x1d8] sm:$0xff] }
 0x2bb   :  { %v1664_v18 = vpack.c.bf16 %v1441_v17, %v1440_v16  ;;  %v1466_v16 = vld [vmem:[%s2628_s3 + $0x270] sm:$0xff]  ;;  %v1467_v17 = vld [vmem:[%s2628_s3 + $0x278] sm:$0xff] }
 0x2bc   :  { %v731_v22 = vmax.f32 %v727_v21, 0.0  ;;  %v1667_v21 = vpack.c.bf16 %v1443_v20, %v1442_v19  ;;  %v1468_v19 = vld [vmem:[%s2628_s3 + $0x280] sm:$0xff]  ;;  %v1469_v20 = vld [vmem:[%s2628_s3 + $0x288] sm:$0xff] }
 0x2be   :  { %752 = vrot.lane.b32.xlu0 %v731_v22, %s1779_s30  ;;  %735 = vst.msk [vmem:[#allocation2 + $0x8] sm:$0xff] %vm44_vm0, %v731_v22  ;;  %v1444_v22 = vld [vmem:[%s2628_s3 + $0x1e0] sm:$0xff] }
 0x2bf   :  { %v687_v23 = vpop.f32.mrb[6].mxu1 }
 0x2c0   :  { %v688_v24 = vadd.f32 %v1393_v9, %v687_v23  ;;  %v689_v25 = vpop.f32.mrb[7].mxu1  ;;  %v1445_v23 = vld [vmem:[%s2628_s3 + $0x1e8] sm:$0xff] }
 0x2c1   :  { %v1446_v25 = vld [vmem:[%s2628_s3 + $0x1f0] sm:$0xff] }
 0x2c2   :  { %714 = vst.msk [vmem:[#allocation3 + $0x18] sm:$0xff] %vm44_vm0, %v688_v24  ;;  %v1670_v24 = vpack.c.bf16 %v1445_v23, %v1444_v22  ;;  %v1470_v22 = vld [vmem:[%s2628_s3 + $0x290] sm:$0xff]  ;;  %v1471_v23 = vld [vmem:[%s2628_s3 + $0x298] sm:$0xff] }
 0x2c5   :  { %v740_v55 = vld [vmem:[#allocation2 + $0x7] sm:$0xff] }
 0x2c7   :  { %v692_v26 = vpop.f32.mrb[8].mxu1 }
 0x2c8   :  { %v693_v27 = vadd.f32 %v1393_v9, %v692_v26  ;;  %v694_v28 = vpop.f32.mrb[9].mxu1  ;;  %v1447_v26 = vld [vmem:[%s2628_s3 + $0x1f8] sm:$0xff] }
 0x2c9   :  { %v720_v29 = vld [vmem:[#allocation3 + $0x10] ss:$2 sm:$0xff]  ;;  %v724_v31 = vld [vmem:[#allocation3 + $0x11] ss:$2 sm:$0xff] }
 0x2ca   :  { %715 = vst.msk [vmem:[#allocation3 + $0x20] sm:$0xff] %vm44_vm0, %v693_v27  ;;  %v728_v32 = vmax.f32 %v720_v29, %v724_v31  ;;  %v1673_v27 = vpack.c.bf16 %v1447_v26, %v1446_v25  ;;  %v1448_v28 = vld [vmem:[%s2628_s3 + $0x200] sm:$0xff]  ;;  %v1449_v29 = vld [vmem:[%s2628_s3 + $0x208] sm:$0xff] }
 0x2cb   :  { %v1676_v31 = vpack.c.bf16 %v1449_v29, %v1448_v28  ;;  %v1472_v25 = vld [vmem:[%s2628_s3 + $0x2a0] sm:$0xff]  ;;  %v1473_v26 = vld [vmem:[%s2628_s3 + $0x2a8] sm:$0xff]  ;;  %v1474_v28 = vld [vmem:[%s2628_s3 + $0x2b0] sm:$0xff] }
 0x2cc   :  { %v732_v33 = vmax.f32 %v728_v32, 0.0  ;;  %v1450_v32 = vld [vmem:[%s2628_s3 + $0x210] sm:$0xff]  ;;  %v1475_v29 = vld [vmem:[%s2628_s3 + $0x2b8] sm:$0xff] }
 0x2ce   :  { %754 = vrot.lane.b32.xlu1 %v732_v33, %s1779_s30  ;;  %736 = vst.msk [vmem:[#allocation2 + $0x10] sm:$0xff] %vm44_vm0, %v732_v33  ;;  %v1451_v33 = vld [vmem:[%s2628_s3 + $0x218] sm:$0xff] }
 0x2cf   :  { %v697_v35 = vpop.f32.mrb[10].mxu1 }
 0x2d0   :  { %v698_v36 = vadd.f32 %v1393_v9, %v697_v35  ;;  %v699_v37 = vpop.f32.mrb[11].mxu1  ;;  %v1679_v35 = vpack.c.bf16 %v1451_v33, %v1450_v32  ;;  %v1476_v32 = vld [vmem:[%s2628_s3 + $0x2c0] sm:$0xff]  ;;  %v1477_v33 = vld [vmem:[%s2628_s3 + $0x2c8] sm:$0xff] }
 0x2d1   :  { %v1453_v37 = vld [vmem:[%s2628_s3 + $0x228] sm:$0xff] }
 0x2d2   :  { %716 = vst.msk [vmem:[#allocation3 + $0x28] sm:$0xff] %vm44_vm0, %v698_v36  ;;  %v1452_v36 = vld [vmem:[%s2628_s3 + $0x220] sm:$0xff] }
 0x2d5   :  { %v744_v38 = vld [vmem:[#allocation2 + $0x9] sm:$0xff] }
 0x2d6   :  { %1428 = vmatprep.mubr.msk.f32.mxu1 %vm44_vm0, %v744_v38  ;;  %v741_v58 = vld [vmem:[#allocation2 + $0xf] sm:$0xff]  ;;  %v1682_v38 = vpack.c.bf16 %v1453_v37, %v1452_v36  ;;  %v1479_v37 = vld [vmem:[%s2628_s3 + $0x2d8] sm:$0xff] }
 0x2d7   :  { %v702_v39 = vpop.f32.mrb[12].mxu1  ;;  %v1478_v36 = vld [vmem:[%s2628_s3 + $0x2d0] sm:$0xff] }
 0x2d8   :  { %v703_v34 = vadd.f32 %v1393_v9, %v702_v39  ;;  %v704_v40 = vpop.f32.mrb[13].mxu1  ;;  %v1454_v39 = vld [vmem:[%s2628_s3 + $0x230] sm:$0xff] }
 0x2d9   :  { %v721_v41 = vld [vmem:[#allocation3 + $0x20] ss:$2 sm:$0xff]  ;;  %v725_v42 = vld [vmem:[#allocation3 + $0x21] ss:$2 sm:$0xff] }
 0x2da   :  { %717 = vst.msk [vmem:[#allocation3 + $0x30] sm:$0xff] %vm44_vm0, %v703_v34  ;;  %v729_v43 = vmax.f32 %v721_v41, %v725_v42  ;;  %v1455_v34 = vld [vmem:[%s2628_s3 + $0x238] sm:$0xff]  ;;  %v1427_v41 = vld [vmem:[%s2630_s4 + $0x1] ss:$0 sm:$0xff] }
 0x2db   :  { %v1685_v40 = vpack.c.bf16 %v1455_v34, %v1454_v39  ;;  %v1480_v39 = vld [vmem:[%s2628_s3 + $0x2e0] sm:$0xff]  ;;  %v1481_v34 = vld [vmem:[%s2628_s3 + $0x2e8] sm:$0xff] }
 0x2dc   :  { %v733_v44 = vmax.f32 %v729_v43, 0.0 }
 0x2dd   :  { %v707_v45 = vpop.f32.mrb[14].mxu1 }
 0x2de   :  { %v708_v46 = vadd.f32 %v1393_v9, %v707_v45  ;;  %v709_v47 = vpop.f32.mrb[15].mxu1  ;;  %756 = vrot.lane.b32.xlu0 %v733_v44, %s1779_s30  ;;  %737 = vst.msk [vmem:[#allocation2 + $0x18] sm:$0xff] %vm44_vm0, %v733_v44  ;;  %v1655_v9 = vpack.c.bf16 %v1435_v8, %v1434_v6  ;;  %v1461_v8 = vld [vmem:[%s2628_s3 + $0x248] sm:$0xff] }
 0x2df   :  { %v1688_v10 = vpack.c.bf16 %v1461_v8, %v1460_v7  ;;  %v1495_v8 = vld [vmem:[%s2628_s3 + $0x340] sm:$0xff] }
 0x2e0   :  { %718 = vst.msk [vmem:[#allocation3 + $0x38] sm:$0x7f] %vm492_vm2, %v708_v46  ;;  %1656 = vmatpush1.bf16.msra.mxu0 %v1655_v9  ;;  %v1462_v9 = vld [vmem:[%s2628_s3 + $0x250] sm:$0xff] }
 0x2e1   :  { %1657 = vmatprep.subr.bf16.mxu0 %v1777_v3 }
 0x2e4   :  { %1659 = vmatpush1.bf16.msra.mxu0 %v1658_v12  ;;  %v1691_v12 = vpack.c.bf16 %v1463_v11, %v1462_v9  ;;  %v1496_v9 = vld [vmem:[%s2628_s3 + $0x348] sm:$0xff]  ;;  %v1497_v11 = vld [vmem:[%s2628_s3 + $0x350] sm:$0xff] }
 0x2e5   :  { %v745_v48 = vld [vmem:[#allocation2 + $0x11] sm:$0xff]  ;;  %1660 = vmatprep.subr.bf16.mxu0 %v1777_v3 }
 0x2e6   :  { %v742_v49 = vld [vmem:[#allocation2 + $0x17] sm:$0xff] }
 0x2e7   :  { %912 = vst.msk [vmem:[#allocation2 + $0x17] sm:$0x1] %vm26_vm1, %v1778_v4  ;;  %v722_v50 = vld [vmem:[#allocation3 + $0x30] ss:$2 sm:$0x7f] }
 0x2e8   :  { %v726_v51 = vld [vmem:[#allocation3 + $0x31] ss:$2 sm:$0x7f]  ;;  %1662 = vmatpush1.bf16.msra.mxu0 %v1661_v15  ;;  %v1694_v15 = vpack.c.bf16 %v1465_v14, %v1464_v13 }
 0x2e9   :  { %v730_v52 = vmax.f32 %v722_v50, %v726_v51  ;;  %1663 = vmatprep.subr.bf16.mxu0 %v1777_v3  ;;  %v1499_v14 = vld [vmem:[%s2628_s3 + $0x360] sm:$0xff] }
 0x2eb   :  { %v734_v53 = vmax.f32 %v730_v52, 0.0 }
 0x2ec   :  { %1665 = vmatpush1.bf16.msra.mxu0 %v1664_v18  ;;  %v1697_v18 = vpack.c.bf16 %v1467_v17, %v1466_v16  ;;  %v1501_v17 = vld [vmem:[%s2628_s3 + $0x370] sm:$0xff] }
 0x2ed   :  { %758 = vrot.lane.b32.xlu1 %v734_v53, %s1779_s30  ;;  %738 = vst.msk [vmem:[#allocation2 + $0x20] sm:$0x7f] %vm492_vm2, %v734_v53  ;;  %1666 = vmatprep.subr.bf16.mxu0 %v1777_v3 }
 0x2f0   :  { %1668 = vmatpush1.bf16.msra.mxu0 %v1667_v21  ;;  %v1700_v21 = vpack.c.bf16 %v1469_v20, %v1468_v19  ;;  %v1503_v20 = vld [vmem:[%s2628_s3 + $0x380] sm:$0xff] }
 0x2f1   :  { %1669 = vmatprep.subr.bf16.mxu0 %v1777_v3 }
 0x2f4   :  { %v746_v60 = vld [vmem:[#allocation2 + $0x19] sm:$0xff]  ;;  %v747_v30 = vld [vmem:[#allocation2 + $0x21] sm:$0x7f]  ;;  %1671 = vmatpush1.bf16.msra.mxu0 %v1670_v24  ;;  %v1703_v24 = vpack.c.bf16 %v1471_v23, %v1470_v22  ;;  %v1505_v23 = vld [vmem:[%s2628_s3 + $0x390] sm:$0xff] }
 0x2f5   :  { %v743_v0 = vld [vmem:[#allocation2 + $0x1f] sm:$0x7f]  ;;  %1672 = vmatprep.subr.bf16.mxu0 %v1777_v3 }
 0x2f8   :  { %1674 = vmatpush1.bf16.msra.mxu0 %v1673_v27  ;;  %v1706_v27 = vpack.c.bf16 %v1473_v26, %v1472_v25  ;;  %v1507_v26 = vld [vmem:[%s2628_s3 + $0x3a0] sm:$0xff] }
 0x2f9   :  { %1675 = vmatprep.subr.bf16.mxu0 %v1777_v3 }
 0x2fc   :  { %1677 = vmatpush1.bf16.msra.mxu0 %v1676_v31  ;;  %v1709_v31 = vpack.c.bf16 %v1475_v29, %v1474_v28  ;;  %v1509_v29 = vld [vmem:[%s2628_s3 + $0x3b0] sm:$0xff] }
 0x2fd   :  { %1678 = vmatprep.subr.bf16.mxu0 %v1777_v3 }
 0x300   :  { %1680 = vmatpush1.bf16.msra.mxu0 %v1679_v35  ;;  %v1712_v35 = vpack.c.bf16 %v1477_v33, %v1476_v32  ;;  %v1485_v33 = vld [vmem:[%s2630_s4 + $0x3] ss:$0 sm:$0xff] }
 0x301   :  { %1681 = vmatprep.subr.bf16.mxu0 %v1777_v3 }
 0x304   :  { %1683 = vmatpush1.bf16.msra.mxu0 %v1682_v38  ;;  %v1715_v38 = vpack.c.bf16 %v1479_v37, %v1478_v36 }
 0x305   :  { %1684 = vmatprep.subr.bf16.mxu0 %v1777_v3 }
 0x308   :  { %1686 = vmatpush1.bf16.msra.mxu0 %v1685_v40  ;;  %v1718_v40 = vpack.c.bf16 %v1481_v34, %v1480_v39 }
 0x309   :  { %1723 = vmatprep.subr.bf16.mxu0 %v1777_v3 }
 0x330   :  { %v753_v54 = vpop.permute.xlu0 %752 }
 0x331   :  { %v764_v56 = vsel %vm44_vm0, %v740_v55, %v753_v54 }
 0x332   :  { %878 = vmatmul.mubr.f32.vlgmr.msra.gmra.mrb[16].mxu1 %v764_v56 }
 0x333   :  { %1429 = vmatprep.mubr.msk.f32.mxu1 %vm44_vm0, %v745_v48  ;;  %1689 = vmatpush1.bf16.msra.mxu1 %v1688_v10  ;;  %v1736_v10 = vpack.c.bf16 %v1496_v9, %v1495_v8 }
 0x334   :  { %1690 = vmatprep.subr.bf16.mxu1 %v1777_v3 }
 0x337   :  { %1692 = vmatpush1.bf16.msra.mxu1 %v1691_v12  ;;  %v1498_v12 = vld [vmem:[%s2628_s3 + $0x358] sm:$0xff] }
 0x338   :  { %1693 = vmatprep.subr.bf16.mxu1 %v1777_v3  ;;  %v1739_v13 = vpack.c.bf16 %v1498_v12, %v1497_v11 }
 0x33b   :  { %1695 = vmatpush1.bf16.msra.mxu1 %v1694_v15  ;;  %v1500_v15 = vld [vmem:[%s2628_s3 + $0x368] sm:$0xff] }
 0x33c   :  { %1696 = vmatprep.subr.bf16.mxu1 %v1777_v3  ;;  %v1742_v16 = vpack.c.bf16 %v1500_v15, %v1499_v14 }
 0x33f   :  { %1698 = vmatpush1.bf16.msra.mxu1 %v1697_v18  ;;  %v1502_v18 = vld [vmem:[%s2628_s3 + $0x378] sm:$0xff] }
 0x340   :  { %v755_v57 = vpop.permute.xlu1 %754  ;;  %1699 = vmatprep.subr.bf16.mxu1 %v1777_v3  ;;  %v1745_v19 = vpack.c.bf16 %v1502_v18, %v1501_v17 }
 0x341   :  { %v765_v59 = vsel %vm44_vm0, %v741_v58, %v755_v57 }
 0x342   :  { %883 = vmatmul.mubr.f32.gmra.mrb[18].mxu1 %v765_v59 }
 0x343   :  { %1430 = vmatprep.mubr.msk.f32.mxu1 %vm44_vm0, %v746_v60  ;;  %1701 = vmatpush1.bf16.msra.mxu1 %v1700_v21  ;;  %v1504_v21 = vld [vmem:[%s2628_s3 + $0x388] sm:$0xff] }
 0x344   :  { %1702 = vmatprep.subr.bf16.mxu1 %v1777_v3  ;;  %v1748_v22 = vpack.c.bf16 %v1504_v21, %v1503_v20 }
 0x347   :  { %1704 = vmatpush1.bf16.msra.mxu1 %v1703_v24  ;;  %v1506_v24 = vld [vmem:[%s2628_s3 + $0x398] sm:$0xff] }
 0x348   :  { %1705 = vmatprep.subr.bf16.mxu1 %v1777_v3  ;;  %v1751_v25 = vpack.c.bf16 %v1506_v24, %v1505_v23 }
 0x34b   :  { %1707 = vmatpush1.bf16.msra.mxu1 %v1706_v27  ;;  %v1508_v27 = vld [vmem:[%s2628_s3 + $0x3a8] sm:$0xff] }
 0x34c   :  { %1708 = vmatprep.subr.bf16.mxu1 %v1777_v3  ;;  %v1754_v28 = vpack.c.bf16 %v1508_v27, %v1507_v26 }
 0x34f   :  { %1710 = vmatpush1.bf16.msra.mxu1 %v1709_v31  ;;  %v1510_v31 = vld [vmem:[%s2628_s3 + $0x3b8] sm:$0xff] }
 0x350   :  { %v757_v61 = vpop.permute.xlu0 %756  ;;  %1711 = vmatprep.subr.bf16.mxu1 %v1777_v3  ;;  %v1757_v32 = vpack.c.bf16 %v1510_v31, %v1509_v29 }
 0x351   :  { %v766_v62 = vsel %vm44_vm0, %v742_v49, %v757_v61 }
 0x352   :  { %888 = vmatmul.mubr.f32.gmra.mrb[20].mxu1 %v766_v62 }
 0x353   :  { %1431 = vmatprep.mubr.msk.f32.mxu1 %vm44_vm0, %v747_v30  ;;  %1713 = vmatpush1.bf16.msra.mxu1 %v1712_v35 }
 0x354   :  { %1714 = vmatprep.subr.bf16.mxu1 %v1777_v3 }
 0x357   :  { %1716 = vmatpush1.bf16.msra.mxu1 %v1715_v38 }
 0x358   :  { %1717 = vmatprep.subr.bf16.mxu1 %v1777_v3 }
 0x35b   :  { %1719 = vmatpush1.bf16.msra.mxu1 %v1718_v40 }
 0x35c   :  { %1720 = vmatprep.subr.bf16.mxu1 %v1777_v3 }
 0x35f   :  { %v759_v63 = vpop.permute.xlu1 %758 }
 0x360   :  { %v767_v1 = vsel %vm44_vm0, %v743_v0, %v759_v63 }
 0x361   :  { %893 = vmatmul.mubr.f32.gmra.mrb[22].mxu1 %v767_v1 }
 0x405   :  { %v879_v42 = vpop.f32.mrb[16].mxu1 }
 0x406   :  { %v880_v43 = vadd.f32 %v1427_v41, %v879_v42  ;;  %v881_v44 = vpop.f32.mrb[17].mxu1  ;;  %v1483_v42 = vld [vmem:[%s2628_s3 + $0x2f8] sm:$0xff] }
 0x407   :  { %v1457_v44 = vld [vmem:[%s2630_s4 + $0x2] ss:$0 sm:$0xff] }
 0x408   :  { %898 = vst.msk [vmem:[#allocation3] sm:$0xff] %vm44_vm0, %v880_v43 }
 0x415   :  { %v884_v45 = vpop.f32.mrb[18].mxu1 }
 0x416   :  { %v885_v46 = vadd.f32 %v1427_v41, %v884_v45  ;;  %v886_v47 = vpop.f32.mrb[19].mxu1 }
 0x418   :  { %899 = vst.msk [vmem:[#allocation3 + $0x8] sm:$0xff] %vm44_vm0, %v885_v46 }
 0x41f   :  { %v902_v48 = vld [vmem:[#allocation3] ss:$2 sm:$0xff]  ;;  %v904_v49 = vld [vmem:[#allocation3 + $0x1] ss:$2 sm:$0xff] }
 0x420   :  { %v906_v50 = vmax.f32 %v902_v48, %v904_v49 }
 0x422   :  { %v908_v51 = vmax.f32 %v906_v50, 0.0 }
 0x424   :  { %919 = vrot.lane.b32.xlu0 %v908_v51, %s1779_s30  ;;  %910 = vst.msk [vmem:[#allocation2 + $0x8] sm:$0xff] %vm44_vm0, %v908_v51 }
 0x425   :  { %v889_v52 = vpop.f32.mrb[20].mxu1 }
 0x426   :  { %v890_v53 = vadd.f32 %v1427_v41, %v889_v52  ;;  %v891_v54 = vpop.f32.mrb[21].mxu1 }
 0x428   :  { %900 = vst.msk [vmem:[#allocation3 + $0x10] sm:$0xff] %vm44_vm0, %v890_v53 }
 0x42b   :  { %v913_v0 = vld [vmem:[#allocation2 + $0x7] sm:$0xff] }
 0x434   :  { %v894_v55 = vpop.f32.mrb[22].mxu1 }
 0x435   :  { %v895_v56 = vadd.f32 %v1427_v41, %v894_v55  ;;  %v896_v57 = vpop.f32.mrb[23].mxu1  ;;  %v1482_v41 = vld [vmem:[%s2628_s3 + $0x2f0] sm:$0xff] }
 0x436   :  { %v1721_v43 = vpack.c.bf16 %v1483_v42, %v1482_v41 }
 0x437   :  { %901 = vst.msk [vmem:[#allocation3 + $0x18] sm:$0x7f] %vm492_vm2, %v895_v56 }
 0x438   :  { %1722 = vmatpush1.bf16.msra.mxu1 %v1721_v43 }
 0x439   :  { %1759 = vmatprep.subr.bf16.mxu1 %v1777_v3 }
 0x43e   :  { %v903_v58 = vld [vmem:[#allocation3 + $0x10] ss:$2 sm:$0x7f]  ;;  %v905_v59 = vld [vmem:[#allocation3 + $0x11] ss:$2 sm:$0x7f] }
 0x43f   :  { %v907_v60 = vmax.f32 %v903_v58, %v905_v59  ;;  %v1487_v59 = vld [vmem:[%s2628_s3 + $0x300] sm:$0xff] }
 0x441   :  { %v909_v61 = vmax.f32 %v907_v60, 0.0  ;;  %v1488_v60 = vld [vmem:[%s2628_s3 + $0x308] sm:$0xff] }
 0x443   :  { %921 = vrot.lane.b32.xlu1 %v909_v61, %s1779_s30  ;;  %911 = vst.msk [vmem:[#allocation2 + $0x10] sm:$0x7f] %vm492_vm2, %v909_v61  ;;  %v1489_v61 = vld [vmem:[%s2628_s3 + $0x310] sm:$0xff] }
 0x44a   :  { %v915_v62 = vld [vmem:[#allocation2 + $0x9] sm:$0xff]  ;;  %v916_v2 = vld [vmem:[#allocation2 + $0x11] sm:$0x7f] }
 0x44b   :  { %v914_v30 = vld [vmem:[#allocation2 + $0xf] sm:$0x7f]  ;;  %1458 = vmatprep.mubr.msk.f32.mxu0 %vm44_vm0, %v915_v62  ;;  %v1724_v62 = vpack.c.bf16 %v1488_v60, %v1487_v59 }
 0x44c   :  { %1048 = vst.msk [vmem:[#allocation2 + $0xf] sm:$0x1] %vm26_vm1, %v1778_v4 }
 0x496   :  { %v920_v63 = vpop.permute.xlu0 %919 }
 0x497   :  { %v925_v1 = vsel %vm44_vm0, %v913_v0, %v920_v63  ;;  %v1491_v0 = vld [vmem:[%s2628_s3 + $0x320] sm:$0xff] }
 0x498   :  { %1031 = vmatmul.mubr.f32.vlgmr.msra.gmra.mrb[32].mxu0 %v925_v1  ;;  %v1492_v1 = vld [vmem:[%s2628_s3 + $0x328] sm:$0xff] }
 0x499   :  { %1459 = vmatprep.mubr.msk.f32.mxu0 %vm44_vm0, %v916_v2  ;;  %1725 = vmatpush1.bf16.msra.mxu0 %v1724_v62  ;;  %v1730_v2 = vpack.c.bf16 %v1492_v1, %v1491_v0 }
 0x49a   :  { %1726 = vmatprep.subr.bf16.mxu0 %v1777_v3 }
 0x4b5   :  { %v922_v5 = vpop.permute.xlu1 %921 }
 0x4b6   :  { %v926_v6 = vsel %vm44_vm0, %v914_v30, %v922_v5  ;;  %v1490_v30 = vld [vmem:[%s2628_s3 + $0x318] sm:$0xff]  ;;  %v1493_v5 = vld [vmem:[%s2628_s3 + $0x330] sm:$0xff] }
 0x4b7   :  { %1036 = vmatmul.mubr.f32.gmra.mrb[34].mxu0 %v926_v6  ;;  %v1727_v63 = vpack.c.bf16 %v1490_v30, %v1489_v61  ;;  %v1494_v6 = vld [vmem:[%s2628_s3 + $0x338] sm:$0xff] }
 0x4b8   :  { %v1733_v7 = vpack.c.bf16 %v1494_v6, %v1493_v5 }
 0x4b9   :  { %1728 = vmatpush1.bf16.msra.mxu0 %v1727_v63 }
 0x4ba   :  { %1729 = vmatprep.subr.bf16.mxu0 %v1777_v3 }
 0x4bd   :  { %1731 = vmatpush1.bf16.msra.mxu0 %v1730_v2 }
 0x4be   :  { %1732 = vmatprep.subr.bf16.mxu0 %v1777_v3 }
 0x4c1   :  { %1734 = vmatpush1.bf16.msra.mxu0 %v1733_v7 }
 0x4c2   :  { %1735 = vmatprep.subr.bf16.mxu0 %v1777_v3 }
 0x4c5   :  { %1737 = vmatpush1.bf16.msra.mxu0 %v1736_v10 }
 0x4c6   :  { %1738 = vmatprep.subr.bf16.mxu0 %v1777_v3 }
 0x4c9   :  { %1740 = vmatpush1.bf16.msra.mxu0 %v1739_v13 }
 0x4ca   :  { %1741 = vmatprep.subr.bf16.mxu0 %v1777_v3 }
 0x4cd   :  { %1743 = vmatpush1.bf16.msra.mxu0 %v1742_v16 }
 0x4ce   :  { %1744 = vmatprep.subr.bf16.mxu0 %v1777_v3 }
 0x4d1   :  { %1746 = vmatpush1.bf16.msra.mxu0 %v1745_v19 }
 0x4d2   :  { %1747 = vmatprep.subr.bf16.mxu0 %v1777_v3 }
 0x4d5   :  { %1749 = vmatpush1.bf16.msra.mxu0 %v1748_v22 }
 0x4d6   :  { %1750 = vmatprep.subr.bf16.mxu0 %v1777_v3 }
 0x4d9   :  { %1752 = vmatpush1.bf16.msra.mxu0 %v1751_v25 }
 0x4da   :  { %1753 = vmatprep.subr.bf16.mxu0 %v1777_v3 }
 0x4dd   :  { %1755 = vmatpush1.bf16.msra.mxu0 %v1754_v28 }
 0x4de   :  { %1756 = vmatprep.subr.bf16.mxu0 %v1777_v3 }
 0x4e1   :  { %1758 = vmatpush1.bf16.msra.mxu0 %v1757_v32 }
 0x56b   :  { %v1032_v45 = vpop.f32.mrb[32].mxu0 }
 0x56c   :  { %v1033_v46 = vadd.f32 %v1457_v44, %v1032_v45  ;;  %v1034_v47 = vpop.f32.mrb[33].mxu0  ;;  %v1288_v45 = vld [vmem:[%s2631_s5] sm:$0xff] }
 0x56e   :  { %1041 = vst.msk [vmem:[#allocation3] sm:$0xff] %vm44_vm0, %v1033_v46  ;;  %v1289_v46 = vld [vmem:[%s2631_s5 + $0x8] sm:$0xff] }
 0x56f   :  { %v1760_v47 = vpack.c.bf16 %v1289_v46, %v1288_v45 }
 0x58a   :  { %v1037_v48 = vpop.f32.mrb[34].mxu0 }
 0x58b   :  { %v1038_v49 = vadd.f32 %v1457_v44, %v1037_v48  ;;  %v1039_v50 = vpop.f32.mrb[35].mxu0  ;;  %v1290_v48 = vld [vmem:[%s2631_s5 + $0x10] sm:$0xff] }
 0x58d   :  { %1042 = vst.msk [vmem:[#allocation3 + $0x8] sm:$0x7f] %vm492_vm2, %v1038_v49  ;;  %v1291_v49 = vld [vmem:[%s2631_s5 + $0x18] sm:$0xff] }
 0x58e   :  { %v1763_v50 = vpack.c.bf16 %v1291_v49, %v1290_v48 }
 0x594   :  { %v1043_v51 = vld [vmem:[#allocation3] ss:$2 sm:$0x7f]  ;;  %v1044_v52 = vld [vmem:[#allocation3 + $0x1] ss:$2 sm:$0x7f] }
 0x595   :  { %v1045_v53 = vmax.f32 %v1043_v51, %v1044_v52  ;;  %v1292_v51 = vld [vmem:[%s2631_s5 + $0x20] sm:$0xff]  ;;  %v1293_v52 = vld [vmem:[%s2631_s5 + $0x28] sm:$0xff] }
 0x597   :  { %v1046_v54 = vmax.f32 %v1045_v53, 0.0  ;;  %v1766_v53 = vpack.c.bf16 %v1293_v52, %v1292_v51 }
 0x599   :  { %1052 = vrot.lane.b32.xlu0 %v1046_v54, %s1779_s30  ;;  %1047 = vst.msk [vmem:[#allocation2 + $0x8] sm:$0x7f] %vm492_vm2, %v1046_v54  ;;  %v1294_v54 = vld [vmem:[%s2631_s5 + $0x30] sm:$0xff] }
 0x5a0   :  { %v1050_v55 = vld [vmem:[#allocation2 + $0x9] sm:$0x7f] }
 0x5a1   :  { %v1049_v56 = vld [vmem:[#allocation2 + $0x7] sm:$0x7f]  ;;  %1486 = vmatprep.mubr.msk.f32.mxu1 %vm44_vm0, %v1050_v55  ;;  %v1295_v55 = vld [vmem:[%s2631_s5 + $0x38] sm:$0xff] }
 0x5a2   :  { %1169 = vst.msk [vmem:[#allocation2 + $0xb] sm:$0x1] %vm26_vm1, %v1778_v4 }
 0x60b   :  { %v1053_v57 = vpop.permute.xlu0 %1052 }
 0x60c   :  { %v1055_v58 = vsel %vm44_vm0, %v1049_v56, %v1053_v57  ;;  %v1769_v56 = vpack.c.bf16 %v1295_v55, %v1294_v54 }
 0x60d   :  { %1157 = vmatmul.mubr.f32.vlgmr.msra.gmra.mrb[24].mxu1 %v1055_v58 }
 0x60e   :  { %1761 = vmatpush3.bf16.msra.mxu1 %v1760_v47  ;;  %1540 = vmatprep.mubr.msk.f32.mxu1 %vm1780_vm4, %v1778_v4  ;;  %v1512_v4 = vld [vmem:[%s2630_s4 + $0x4] ss:$0 sm:$0xff] }
 0x60f   :  { %1762 = vmatprep.subr.bf16.mxu1 %v1777_v3 }
 0x612   :  { %1764 = vmatpush3.bf16.msra.mxu1 %v1763_v50 }
 0x613   :  { %1765 = vmatprep.subr.bf16.mxu1 %v1777_v3 }
 0x616   :  { %1767 = vmatpush3.bf16.msra.mxu1 %v1766_v53 }
 0x617   :  { %1768 = vmatprep.subr.bf16.mxu1 %v1777_v3  ;;  %v1296_v3 = vld [vmem:[%s2632_s6] sm:$0x1] }
 0x61a   :  { %1770 = vmatpush3.bf16.msra.mxu1 %v1769_v56 }
 0x6e0   :  { %v1158_v35 = vpop.f32.mrb[24].mxu1 }
 0x6e1   :  { %v1159_v36 = vadd.f32 %v1485_v33, %v1158_v35  ;;  %v1160_v37 = vpop.f32.mrb[25].mxu1 }
 0x6e3   :  { %1162 = vst.msk [vmem:[#allocation3] sm:$0x7f] %vm492_vm2, %v1159_v36 }
 0x6ea   :  { %v1163_v38 = vld [vmem:[#allocation3] ss:$2 sm:$0x7]  ;;  %v1164_v39 = vld [vmem:[#allocation3 + $0x1] ss:$2 sm:$0x7] }
 0x6eb   :  { %v1165_v34 = vmax.f32 %v1163_v38, %v1164_v39 }
 0x6ed   :  { %v1166_v40 = vmax.f32 %v1165_v34, 0.0 }
 0x6ef   :  { %1173 = vrot.lane.b32.xlu1 %v1166_v40, %s1779_s30  ;;  %1168 = vst.msk [vmem:[#allocation2 + $0x8] sm:$0x7] %vm1167_vm3, %v1166_v40 }
 0x6f6   :  { %v1171_v41 = vld [vmem:[#allocation2 + $0x9] sm:$0x7] }
 0x6f7   :  { %1513 = vmatprep.mubr.msk.f32.mxu0 %vm44_vm0, %v1171_v41  ;;  %v1170_v43 = vld [vmem:[#allocation2 + $0x7] sm:$0x7] }
 0x761   :  { %v1174_v42 = vpop.permute.xlu1 %1173 }
 0x762   :  { %v1176_v44 = vsel %vm44_vm0, %v1170_v43, %v1174_v42 }
 0x763   :  { %1278 = vmatmul.mubr.f32.vlgmr.msra.gmra.mrb[36].mxu0 %v1176_v44 }
 0x836   :  { %v1279_v57 = vpop.f32.mrb[36].mxu0 }
 0x837   :  { %v1280_v58 = vadd.f32 %v1512_v4, %v1279_v57  ;;  %v1281_v59 = vpop.f32.mrb[37].mxu0 }
 0x839   :  { %1283 = vst.msk [vmem:[#allocation3] sm:$0x7] %vm1167_vm3, %v1280_v58 }
 0x840   :  { %v1284_v60 = vld [vmem:[#allocation3] ss:$2 sm:$0x1]  ;;  %v1285_v61 = vld [vmem:[#allocation3 + $0x1] ss:$2 sm:$0x1] }
 0x841   :  { %v1286_v62 = vmax.f32 %v1284_v60, %v1285_v61 }
 0x843   :  { %v1287_v30 = vmax.f32 %v1286_v62, 0.0 }
 0x845   :  { %1541 = vmatmul.mubr.msk.f32.vlgmr.msra.gmra.mrb[26].mxu1 %vm44_vm0, %v1287_v30 }
 0x918   :  { %v1366_v63 = vpop.f32.mrb[26].mxu1 }
 0x919   :  { %v1367_v0 = vadd.f32 %v1366_v63, %v1296_v3  ;;  %v1542_v1 = vpop.f32.mrb[27].mxu1 }
 0x91b   :  { %1775 = vtanh.f32 %v1367_v0 }
 0x925   :  { %v1776_v2 = vpop.eup %1775 }
 0x926   :  { %1371 = vst.msk [vmem:[%s2633_s7] sm:$0x1] %vm26_vm1, %v1776_v2 }

</bundles_post_ra>
